<compile_context>
chip_gen: v7x
topology: tpu7x:2x2x1
jax: 0.10.0
libtpu: 0.0.40
codegen_flags: <defaults>
</compile_context>

<pallas_src>
import functools

import jax
import jax.numpy as jnp
from jax.experimental import pallas as pl
from jax.experimental.pallas import tpu as pltpu

# ---- small BERT-like config (bert-base scaled down) ----
B = 2            # batch
S = 16           # sequence length
H = 128          # hidden size (stand-in for 768)
NH = 2           # attention heads
DH = H // NH     # head dim
FF = 4 * H       # intermediate size
LAYERS = 2       # encoder layers
VOCAB = 100
MAXPOS = 32
NUM_LABELS = 3
LN_EPS = 1e-12


# ---------------- fused encoder kernel ----------------

def _encoder_layer_kernel(h0_ref, mask_ref, embg_ref, embb_ref,
                          wqkv_ref, bqkv_ref, wo_ref, bo_ref,
                          ln1g_ref, ln1b_ref, w1_ref, b1_ref,
                          w2_ref, b2_ref, ln2g_ref, ln2b_ref,
                          h_ref, probs_ref, *, s, nh, dh, hd):
    """One (batch b, layer l) grid step of the BERT encoder.

    h_ref is the resident last-hidden-state block for batch b; it carries the
    hidden state across the (inner, sequential) layer axis.
    """
    l = pl.program_id(1)
    scale = 1.0 / (dh ** 0.5)

    def _ln(x, g, b):
        mean = jnp.mean(x, axis=-1, keepdims=True)
        var = jnp.mean(jnp.square(x - mean), axis=-1, keepdims=True)
        return (x - mean) * jax.lax.rsqrt(var + LN_EPS) * g + b

    def _mm(a, w):
        # bf16 operands, f32 accumulation (MXU-native recipe).
        return jnp.dot(a.astype(jnp.bfloat16), w.astype(jnp.bfloat16),
                       preferred_element_type=jnp.float32)

    # Layer 0: fold the embedding LayerNorm into this kernel.
    @pl.when(l == 0)
    def _():
        h_ref[0] = _ln(h0_ref[0], embg_ref[...], embb_ref[...])

    h = h_ref[0]            # [S, H] f32, resident across layers
    mask = mask_ref[0]      # [1, S] additive attention mask

    # Fused QKV projection: one [H, 3H] matmul.
    qkv = _mm(h, wqkv_ref[0]) + bqkv_ref[0]          # [S, 3H] f32

    wo = wo_ref[0]                                   # [H, H] bf16
    attn = jnp.zeros((s, hd), jnp.float32)
    for hh in range(nh):                             # static unroll over heads
        q = qkv[:, hh * dh:(hh + 1) * dh]                       # [S, DH]
        k = qkv[:, hd + hh * dh:hd + (hh + 1) * dh]             # [S, DH]
        v = qkv[:, 2 * hd + hh * dh:2 * hd + (hh + 1) * dh]     # [S, DH]

        # Contract on the DH axis directly (no explicit k.T relayout).
        scores = jax.lax.dot_general(
            q.astype(jnp.bfloat16), k.astype(jnp.bfloat16),
            dimension_numbers=(((1,), (1,)), ((), ())),
            preferred_element_type=jnp.float32) * scale          # [S, S]
        scores = scores + mask

        mx = jnp.max(scores, axis=-1, keepdims=True)
        p = jnp.exp(scores - mx)
        denom = jnp.sum(p, axis=-1, keepdims=True)
        p = p * pl.reciprocal(denom, approx=True)                # softmax probs

        # Lane-contiguous probability slab: [:, hh*S:(hh+1)*S] of [S, NH*S].
        probs_ref[0, 0, :, hh * s:(hh + 1) * s] = p

        ctx = _mm(p, v)                                          # [S, DH]
        # Output projection per head, accumulated: ctx @ Wo[head rows, :].
        attn = attn + _mm(ctx, wo[hh * dh:(hh + 1) * dh, :])     # [S, H]

    attn = attn + bo_ref[0]

    # Add + LayerNorm 1 (fused epilogue).
    h1 = _ln(attn + h, ln1g_ref[0], ln1b_ref[0])

    # Feed-forward: w1 + GELU + w2, then Add + LayerNorm 2 (fused).
    ff = _mm(h1, w1_ref[0]) + b1_ref[0]              # [S, FF]
    # TODO(synk): HF BERT uses exact erf-GELU; tanh approximation used here.
    ff = 0.5 * ff * (1.0 + jnp.tanh(
        0.7978845608028654 * (ff + 0.044715 * ff * ff * ff)))
    ff2 = _mm(ff, w2_ref[0]) + b2_ref[0]             # [S, H]

    h_ref[0] = _ln(ff2 + h1, ln2g_ref[0], ln2b_ref[0])


def encoder(params, h0, add_mask):
    """Runs all encoder layers in a single pallas_call.

    Returns (last_hidden_state [B,S,H], probs_slab [LAYERS,B,S,NH*S]).
    """
    Bn, Sn, Hd = h0.shape
    bf = jnp.bfloat16
    kernel = functools.partial(_encoder_layer_kernel, s=Sn, nh=NH, dh=DH, hd=Hd)

    return pl.pallas_call(
        kernel,
        out_shape=(jax.ShapeDtypeStruct((Bn, Sn, Hd), jnp.float32),
                   jax.ShapeDtypeStruct((LAYERS, Bn, Sn, NH * Sn), jnp.float32)),
        grid=(Bn, LAYERS),
        in_specs=[
            pl.BlockSpec((1, Sn, Hd), lambda b, l: (b, 0, 0)),          # h0 (embeddings)
            pl.BlockSpec((1, 1, Sn), lambda b, l: (b, 0, 0)),           # additive mask
            pl.BlockSpec((1, Hd), lambda b, l: (0, 0)),                 # emb LN gamma
            pl.BlockSpec((1, Hd), lambda b, l: (0, 0)),                 # emb LN beta
            pl.BlockSpec((1, Hd, 3 * Hd), lambda b, l: (l, 0, 0)),      # Wqkv
            pl.BlockSpec((1, 1, 3 * Hd), lambda b, l: (l, 0, 0)),       # bqkv
            pl.BlockSpec((1, Hd, Hd), lambda b, l: (l, 0, 0)),          # Wo
            pl.BlockSpec((1, 1, Hd), lambda b, l: (l, 0, 0)),           # bo
            pl.BlockSpec((1, 1, Hd), lambda b, l: (l, 0, 0)),           # ln1 gamma
            pl.BlockSpec((1, 1, Hd), lambda b, l: (l, 0, 0)),           # ln1 beta
            pl.BlockSpec((1, Hd, FF), lambda b, l: (l, 0, 0)),          # W1
            pl.BlockSpec((1, 1, FF), lambda b, l: (l, 0, 0)),           # b1
            pl.BlockSpec((1, FF, Hd), lambda b, l: (l, 0, 0)),          # W2
            pl.BlockSpec((1, 1, Hd), lambda b, l: (l, 0, 0)),           # b2
            pl.BlockSpec((1, 1, Hd), lambda b, l: (l, 0, 0)),           # ln2 gamma
            pl.BlockSpec((1, 1, Hd), lambda b, l: (l, 0, 0)),           # ln2 beta
        ],
        out_specs=(
            pl.BlockSpec((1, Sn, Hd), lambda b, l: (b, 0, 0)),          # hidden (resident over l)
            pl.BlockSpec((1, 1, Sn, NH * Sn), lambda b, l: (l, b, 0, 0)),  # probs slab
        ),
        compiler_params=pltpu.CompilerParams(
            dimension_semantics=("parallel", "arbitrary")),
    )(h0, add_mask,
      params["emb_ln_g"], params["emb_ln_b"],
      params["wqkv"].astype(bf), params["bqkv"],
      params["wo"].astype(bf), params["bo"],
      params["ln1_g"], params["ln1_b"],
      params["w1"].astype(bf), params["b1"],
      params["w2"].astype(bf), params["b2"],
      params["ln2_g"], params["ln2_b"])


# ---------------- fused heads kernel (pooler + classifiers + CE) ----------------

def _heads_kernel(cls_ref, pw_ref, pb_ref, cw_ref, cb_ref, dw_ref, db_ref,
                  coh_ref, doh_ref,
                  clogits_ref, dlogits_ref, closs_ref, dloss_ref):
    pooled = jnp.tanh(
        jnp.dot(cls_ref[...], pw_ref[...], preferred_element_type=jnp.float32)
        + pb_ref[...])
    # dropout(p=0.1): identity at inference
    # gradient reversal (ReversalLayerF): identity in the forward pass
    cl = jnp.dot(pooled, cw_ref[...], preferred_element_type=jnp.float32) + cb_ref[...]
    dl = jnp.dot(pooled, dw_ref[...], preferred_element_type=jnp.float32) + db_ref[...]
    clogits_ref[...] = cl
    dlogits_ref[...] = dl

    def ce(logits, onehot):
        mx = jnp.max(logits, axis=-1, keepdims=True)
        lse = jnp.log(jnp.sum(jnp.exp(logits - mx), axis=-1, keepdims=True)) + mx
        picked = jnp.sum(onehot * logits, axis=-1, keepdims=True)
        return jnp.mean(lse - picked, keepdims=True)

    closs_ref[...] = ce(cl, coh_ref[...])
    dloss_ref[...] = ce(dl, doh_ref[...])


def heads(params, cls_tok, c_onehot, d_onehot):
    Bn, Hd = cls_tok.shape
    nl = params["cls_w"].shape[1]
    return pl.pallas_call(
        _heads_kernel,
        out_shape=(jax.ShapeDtypeStruct((Bn, nl), jnp.float32),
                   jax.ShapeDtypeStruct((Bn, 2), jnp.float32),
                   jax.ShapeDtypeStruct((1, 1), jnp.float32),
                   jax.ShapeDtypeStruct((1, 1), jnp.float32)),
        grid=(1,),
        in_specs=[pl.BlockSpec((Bn, Hd), lambda i: (0, 0)),
                  pl.BlockSpec((Hd, Hd), lambda i: (0, 0)),
                  pl.BlockSpec((1, Hd), lambda i: (0, 0)),
                  pl.BlockSpec((Hd, nl), lambda i: (0, 0)),
                  pl.BlockSpec((1, nl), lambda i: (0, 0)),
                  pl.BlockSpec((Hd, 2), lambda i: (0, 0)),
                  pl.BlockSpec((1, 2), lambda i: (0, 0)),
                  pl.BlockSpec((Bn, nl), lambda i: (0, 0)),
                  pl.BlockSpec((Bn, 2), lambda i: (0, 0))],
        out_specs=(pl.BlockSpec((Bn, nl), lambda i: (0, 0)),
                   pl.BlockSpec((Bn, 2), lambda i: (0, 0)),
                   pl.BlockSpec((1, 1), lambda i: (0, 0)),
                   pl.BlockSpec((1, 1), lambda i: (0, 0))),
    )(cls_tok, params["pool_w"], params["pool_b"],
      params["cls_w"], params["cls_b"],
      params["dom_w"], params["dom_b"],
      c_onehot, d_onehot)


# ---------------- parameter init (deterministic, synthetic) ----------------

def init_params(key):
    def nrm(k, shape, scale=0.02):
        return scale * jax.random.normal(k, shape, dtype=jnp.float32)

    keys = jax.random.split(key, 10)
    return {
        "word_emb": nrm(keys[0], (VOCAB, H)),
        "pos_emb": nrm(keys[1], (MAXPOS, H)),
        "type_emb": nrm(keys[2], (2, H)),
        "emb_ln_g": jnp.ones((1, H), jnp.float32),
        "emb_ln_b": jnp.zeros((1, H), jnp.float32),
        # per-layer weights stacked along a leading LAYERS axis
        "wqkv": nrm(keys[3], (LAYERS, H, 3 * H)),
        "bqkv": jnp.zeros((LAYERS, 1, 3 * H), jnp.float32),
        "wo": nrm(keys[4], (LAYERS, H, H)),
        "bo": jnp.zeros((LAYERS, 1, H), jnp.float32),
        "ln1_g": jnp.ones((LAYERS, 1, H), jnp.float32),
        "ln1_b": jnp.zeros((LAYERS, 1, H), jnp.float32),
        "w1": nrm(keys[5], (LAYERS, H, FF)),
        "b1": jnp.zeros((LAYERS, 1, FF), jnp.float32),
        "w2": nrm(keys[6], (LAYERS, FF, H)),
        "b2": jnp.zeros((LAYERS, 1, H), jnp.float32),
        "ln2_g": jnp.ones((LAYERS, 1, H), jnp.float32),
        "ln2_b": jnp.zeros((LAYERS, 1, H), jnp.float32),
        "pool_w": nrm(keys[7], (H, H)),
        "pool_b": jnp.zeros((1, H), jnp.float32),
        "cls_w": nrm(keys[8], (H, NUM_LABELS)),
        "cls_b": jnp.zeros((1, NUM_LABELS), jnp.float32),
        "dom_w": nrm(keys[9], (H, 2)),
        "dom_b": jnp.zeros((1, 2), jnp.float32),
    }


# ---------------- BertDANN forward ----------------

def bert_dann_forward(params, input_ids, attention_mask,
                      class_labels=None, domain_labels=None, alpha=0.0):
    Bn, Sn = input_ids.shape

    # --- embeddings: gathers + broadcast add in JAX; LayerNorm fused into the
    #     encoder kernel at layer 0 ---
    word = params["word_emb"][input_ids]                       # [B, S, H]
    pos = params["pos_emb"][:Sn][None, :, :]                   # [1, S, H]
    # TODO(synk): token_type_ids hardcoded to all-zeros (type 0).
    tok = params["type_emb"][0][None, None, :]                 # [1, 1, H]
    h0 = word + pos + tok                                      # [B, S, H]

    # additive attention mask: (1 - mask) * -10000, per batch
    add_mask = ((1.0 - attention_mask.astype(jnp.float32)) * -10000.0)
    add_mask = add_mask.reshape(Bn, 1, Sn)

    # --- single fused encoder pallas_call ---
    last_hidden_state, probs_slab = encoder(params, h0, add_mask)

    attentions = []
    for l in range(LAYERS):
        p = probs_slab[l].reshape(Bn, Sn, NH, Sn).transpose(0, 2, 1, 3)
        attentions.append(p)                                   # [B, NH, S, S]

    # --- pooler + classifier heads + CE losses: one fused kernel ---
    cls_tok = last_hidden_state[:, 0, :]                       # [B, H]
    c_lab = class_labels if class_labels is not None else jnp.zeros((Bn,), jnp.int32)
    d_lab = domain_labels if domain_labels is not None else jnp.zeros((Bn,), jnp.int32)
    c_onehot = jax.nn.one_hot(c_lab.reshape(-1), NUM_LABELS, dtype=jnp.float32)
    d_onehot = jax.nn.one_hot(d_lab.reshape(-1), 2, dtype=jnp.float32)

    class_logits, domain_logits, closs, dloss = heads(params, cls_tok,
                                                      c_onehot, d_onehot)

    class_loss = closs[0, 0] if class_labels is not None else None
    domain_loss = dloss[0, 0] if domain_labels is not None else None

    return (class_loss, class_logits, domain_loss, domain_logits,
            last_hidden_state, tuple(attentions))


# ---------------- main ----------------

if __name__ == "__main__":
    key = jax.random.PRNGKey(0)
    pkey, ikey = jax.random.split(key)
    params = init_params(pkey)

    input_ids = jax.random.randint(ikey, (B, S), 0, VOCAB, dtype=jnp.int32)
    attention_mask = jnp.ones((B, S), dtype=jnp.int32)
    attention_mask = attention_mask.at[1, S - 4:].set(0)   # pad tail of seq 1
    class_labels = jnp.array([0, 2], dtype=jnp.int32)
    domain_labels = jnp.array([1, 0], dtype=jnp.int32)

    fwd = jax.jit(bert_dann_forward)
    outputs = fwd(params, input_ids, attention_mask,
                  class_labels=class_labels, domain_labels=domain_labels,
                  alpha=0.0)
    outputs = jax.block_until_ready(outputs)

    class_loss, class_logits, domain_loss, domain_logits, last_hidden, attns = outputs
    assert class_logits.shape == (B, NUM_LABELS)
    assert domain_logits.shape == (B, 2)
    assert last_hidden.shape == (B, S, H)
    assert len(attns) == LAYERS and attns[0].shape == (B, NH, S, S)
    assert jnp.isfinite(class_loss) and jnp.isfinite(domain_loss)
    assert bool(jnp.all(jnp.isfinite(last_hidden)))
    print("KERNEL_OK")
</pallas_src>

<mosaic_0001>
module attributes {stable_mosaic.version = 11 : i64} {
  func.func @_encoder_layer_kernel(%arg0: i32, %arg1: i32, %arg2: memref<1x16x128xf32, #tpu.memory_space<vmem>>, %arg3: memref<1x1x16xf32, #tpu.memory_space<vmem>>, %arg4: memref<1x128xf32, #tpu.memory_space<vmem>>, %arg5: memref<1x128xf32, #tpu.memory_space<vmem>>, %arg6: memref<1x128x384xbf16, #tpu.memory_space<vmem>>, %arg7: memref<1x1x384xf32, #tpu.memory_space<vmem>>, %arg8: memref<1x128x128xbf16, #tpu.memory_space<vmem>>, %arg9: memref<1x1x128xf32, #tpu.memory_space<vmem>>, %arg10: memref<1x1x128xf32, #tpu.memory_space<vmem>>, %arg11: memref<1x1x128xf32, #tpu.memory_space<vmem>>, %arg12: memref<1x128x512xbf16, #tpu.memory_space<vmem>>, %arg13: memref<1x1x512xf32, #tpu.memory_space<vmem>>, %arg14: memref<1x512x128xbf16, #tpu.memory_space<vmem>>, %arg15: memref<1x1x128xf32, #tpu.memory_space<vmem>>, %arg16: memref<1x1x128xf32, #tpu.memory_space<vmem>>, %arg17: memref<1x1x128xf32, #tpu.memory_space<vmem>>, %arg18: memref<1x16x128xf32, #tpu.memory_space<vmem>>, %arg19: memref<1x1x16x32xf32, #tpu.memory_space<vmem>>) attributes {dimension_semantics = [#tpu.dimension_semantics<parallel>, #tpu.dimension_semantics<arbitrary>], iteration_bounds = array<i64: 2, 2>, scalar_prefetch = 0 : i64, scratch_operands = 0 : i64, tpu.core_type = #tpu.core_type<tc>, window_params = [{transform_indices = @transform_0, window_bounds = array<i64: 1, 16, 128>}, {transform_indices = @transform_1, window_bounds = array<i64: 1, 1, 16>}, {pipeline_mode = #tpu.pipeline_mode<synchronous>, transform_indices = @transform_2, window_bounds = array<i64: 1, 128>}, {pipeline_mode = #tpu.pipeline_mode<synchronous>, transform_indices = @transform_3, window_bounds = array<i64: 1, 128>}, {transform_indices = @transform_4, window_bounds = array<i64: 1, 128, 384>}, {transform_indices = @transform_5, window_bounds = array<i64: 1, 1, 384>}, {transform_indices = @transform_6, window_bounds = array<i64: 1, 128, 128>}, {transform_indices = @transform_7, window_bounds = array<i64: 1, 1, 128>}, {transform_indices = @transform_8, window_bounds = array<i64: 1, 1, 128>}, {transform_indices = @transform_9, window_bounds = array<i64: 1, 1, 128>}, {transform_indices = @transform_10, window_bounds = array<i64: 1, 128, 512>}, {transform_indices = @transform_11, window_bounds = array<i64: 1, 1, 512>}, {transform_indices = @transform_12, window_bounds = array<i64: 1, 512, 128>}, {transform_indices = @transform_13, window_bounds = array<i64: 1, 1, 128>}, {transform_indices = @transform_14, window_bounds = array<i64: 1, 1, 128>}, {transform_indices = @transform_15, window_bounds = array<i64: 1, 1, 128>}, {transform_indices = @transform_16, window_bounds = array<i64: 1, 16, 128>}, {transform_indices = @transform_17, window_bounds = array<i64: 1, 1, 16, 32>}]} {
    %c0_i32 = arith.constant 0 : i32
    %0 = arith.cmpi eq, %arg1, %c0_i32 : i32
    %1 = arith.extui %0 : i1 to i32
    %c0_i32_0 = arith.constant 0 : i32
    %2 = arith.cmpi ne, %1, %c0_i32_0 : i32
    scf.if %2 {
      %c0_81 = arith.constant 0 : index
      %c0_82 = arith.constant 0 : index
      %c0_83 = arith.constant 0 : index
      %168 = vector.load %arg2[%c0_81, %c0_82, %c0_83] : memref<1x16x128xf32, #tpu.memory_space<vmem>>, vector<1x16x128xf32>
      %169 = vector.shape_cast %168 : vector<1x16x128xf32> to vector<16x128xf32>
      %c0_84 = arith.constant 0 : index
      %c0_85 = arith.constant 0 : index
      %170 = vector.load %arg4[%c0_84, %c0_85] : memref<1x128xf32, #tpu.memory_space<vmem>>, vector<1x128xf32>
      %c0_86 = arith.constant 0 : index
      %c0_87 = arith.constant 0 : index
      %171 = vector.load %arg5[%c0_86, %c0_87] : memref<1x128xf32, #tpu.memory_space<vmem>>, vector<1x128xf32>
      %cst_88 = arith.constant dense<0.000000e+00> : vector<16xf32>
      %172 = vector.multi_reduction <add>, %169, %cst_88 [1] : vector<16x128xf32> to vector<16xf32>
      %173 = vector.shape_cast %172 : vector<16xf32> to vector<16x1xf32>
      %cst_89 = arith.constant 1.280000e+02 : f32
      %174 = vector.broadcast %cst_89 : f32 to vector<16x1xf32>
      %175 = arith.divf %173, %174 : vector<16x1xf32>
      %176 = vector.broadcast %175 : vector<16x1xf32> to vector<16x128xf32>
      %177 = arith.subf %169, %176 : vector<16x128xf32>
      %178 = arith.mulf %177, %177 : vector<16x128xf32>
      %cst_90 = arith.constant dense<0.000000e+00> : vector<16xf32>
      %179 = vector.multi_reduction <add>, %178, %cst_90 [1] : vector<16x128xf32> to vector<16xf32>
      %180 = vector.shape_cast %179 : vector<16xf32> to vector<16x1xf32>
      %cst_91 = arith.constant 1.280000e+02 : f32
      %181 = vector.broadcast %cst_91 : f32 to vector<16x1xf32>
      %182 = arith.divf %180, %181 : vector<16x1xf32>
      %183 = vector.broadcast %175 : vector<16x1xf32> to vector<16x128xf32>
      %184 = arith.subf %169, %183 : vector<16x128xf32>
      %cst_92 = arith.constant 9.99999996E-13 : f32
      %185 = vector.broadcast %cst_92 : f32 to vector<16x1xf32>
      %186 = arith.addf %182, %185 : vector<16x1xf32>
      %187 = math.rsqrt %186 : vector<16x1xf32>
      %188 = vector.broadcast %187 : vector<16x1xf32> to vector<16x128xf32>
      %189 = arith.mulf %184, %188 : vector<16x128xf32>
      %190 = vector.broadcast %170 : vector<1x128xf32> to vector<16x128xf32>
      %191 = arith.mulf %189, %190 : vector<16x128xf32>
      %192 = vector.broadcast %171 : vector<1x128xf32> to vector<16x128xf32>
      %193 = arith.addf %191, %192 : vector<16x128xf32>
      %c0_93 = arith.constant 0 : index
      %c0_94 = arith.constant 0 : index
      %c0_95 = arith.constant 0 : index
      %194 = vector.load %arg18[%c0_93, %c0_94, %c0_95] : memref<1x16x128xf32, #tpu.memory_space<vmem>>, vector<1x16x128xf32>
      %195 = vector.shape_cast %194 : vector<1x16x128xf32> to vector<16x128xf32>
      %196 = vector.shape_cast %193 : vector<16x128xf32> to vector<1x16x128xf32>
      tpu.vector_store %arg18[%c0_93, %c0_94, %c0_95], %196 {strides = array<i32>} : memref<1x16x128xf32, #tpu.memory_space<vmem>>, vector<1x16x128xf32>,
    } else {
    }
    %c0 = arith.constant 0 : index
    %c0_1 = arith.constant 0 : index
    %c0_2 = arith.constant 0 : index
    %3 = vector.load %arg18[%c0, %c0_1, %c0_2] : memref<1x16x128xf32, #tpu.memory_space<vmem>>, vector<1x16x128xf32>
    %4 = vector.shape_cast %3 : vector<1x16x128xf32> to vector<16x128xf32>
    %c0_3 = arith.constant 0 : index
    %c0_4 = arith.constant 0 : index
    %c0_5 = arith.constant 0 : index
    %5 = vector.load %arg3[%c0_3, %c0_4, %c0_5] : memref<1x1x16xf32, #tpu.memory_space<vmem>>, vector<1x1x16xf32>
    %6 = vector.shape_cast %5 : vector<1x1x16xf32> to vector<1x16xf32>
    %c0_6 = arith.constant 0 : index
    %c0_7 = arith.constant 0 : index
    %c0_8 = arith.constant 0 : index
    %7 = vector.load %arg6[%c0_6, %c0_7, %c0_8] : memref<1x128x384xbf16, #tpu.memory_space<vmem>>, vector<1x128x384xbf16>
    %8 = vector.shape_cast %7 : vector<1x128x384xbf16> to vector<128x384xbf16>
    %9 = arith.truncf %4 : vector<16x128xf32> to vector<16x128xbf16>
    %cst = arith.constant dense<0.000000e+00> : vector<16x384xf32>
    %10 = tpu.matmul %9, %8, %cst {dimension_numbers = #tpu.dot_dimension_numbers<[1], [0], [0], [1], [0, 0, 1, 1], [], []>} : vector<16x128xbf16>, vector<128x384xbf16>, vector<16x384xf32> -> vector<16x384xf32>
    %c0_9 = arith.constant 0 : index
    %c0_10 = arith.constant 0 : index
    %c0_11 = arith.constant 0 : index
    %11 = vector.load %arg7[%c0_9, %c0_10, %c0_11] : memref<1x1x384xf32, #tpu.memory_space<vmem>>, vector<1x1x384xf32>
    %12 = vector.shape_cast %11 : vector<1x1x384xf32> to vector<1x384xf32>
    %13 = vector.broadcast %12 : vector<1x384xf32> to vector<16x384xf32>
    %14 = arith.addf %10, %13 : vector<16x384xf32>
    %c0_12 = arith.constant 0 : index
    %c0_13 = arith.constant 0 : index
    %c0_14 = arith.constant 0 : index
    %15 = vector.load %arg8[%c0_12, %c0_13, %c0_14] : memref<1x128x128xbf16, #tpu.memory_space<vmem>>, vector<1x128x128xbf16>
    %16 = vector.shape_cast %15 : vector<1x128x128xbf16> to vector<128x128xbf16>
    %cst_15 = arith.constant 0.000000e+00 : f32
    %17 = vector.broadcast %cst_15 : f32 to vector<16x128xf32>
    %18 = vector.extract_strided_slice %14 {offsets = [0, 0], sizes = [16, 64], strides = [1, 1]} : vector<16x384xf32> to vector<16x64xf32>
    %19 = vector.extract_strided_slice %14 {offsets = [0, 128], sizes = [16, 64], strides = [1, 1]} : vector<16x384xf32> to vector<16x64xf32>
    %20 = vector.extract_strided_slice %14 {offsets = [0, 256], sizes = [16, 64], strides = [1, 1]} : vector<16x384xf32> to vector<16x64xf32>
    %21 = arith.truncf %18 : vector<16x64xf32> to vector<16x64xbf16>
    %22 = arith.truncf %19 : vector<16x64xf32> to vector<16x64xbf16>
    %cst_16 = arith.constant dense<0.000000e+00> : vector<16x16xf32>
    %23 = tpu.matmul %21, %22, %cst_16 {dimension_numbers = #tpu.dot_dimension_numbers<[1], [1], [0], [0], [0, 0, 1, 0], [], []>} : vector<16x64xbf16>, vector<16x64xbf16>, vector<16x16xf32> -> vector<16x16xf32>
    %cst_17 = arith.constant 1.250000e-01 : f32
    %24 = vector.broadcast %cst_17 : f32 to vector<16x16xf32>
    %25 = arith.mulf %23, %24 : vector<16x16xf32>
    %26 = vector.broadcast %6 : vector<1x16xf32> to vector<16x16xf32>
    %27 = arith.addf %25, %26 : vector<16x16xf32>
    %cst_18 = arith.constant dense<0xFF800000> : vector<16xf32>
    %28 = vector.multi_reduction <maximumf>, %27, %cst_18 [1] : vector<16x16xf32> to vector<16xf32>
    %29 = vector.shape_cast %28 : vector<16xf32> to vector<16x1xf32>
    %30 = vector.broadcast %29 : vector<16x1xf32> to vector<16x16xf32>
    %31 = arith.subf %27, %30 : vector<16x16xf32>
    %32 = math.exp %31 : vector<16x16xf32>
    %cst_19 = arith.constant dense<0.000000e+00> : vector<16xf32>
    %33 = vector.multi_reduction <add>, %32, %cst_19 [1] : vector<16x16xf32> to vector<16xf32>
    %34 = vector.shape_cast %33 : vector<16xf32> to vector<16x1xf32>
    %35 = tpu.reciprocal %34 {approx = true} : vector<16x1xf32> -> vector<16x1xf32>
    %36 = vector.broadcast %35 : vector<16x1xf32> to vector<16x16xf32>
    %37 = arith.mulf %32, %36 : vector<16x16xf32>
    %c0_20 = arith.constant 0 : index
    %c0_21 = arith.constant 0 : index
    %c0_22 = arith.constant 0 : index
    %c0_23 = arith.constant 0 : index
    %38 = vector.load %arg19[%c0_20, %c0_21, %c0_22, %c0_23] : memref<1x1x16x32xf32, #tpu.memory_space<vmem>>, vector<1x1x16x16xf32>
    %39 = vector.shape_cast %38 : vector<1x1x16x16xf32> to vector<16x16xf32>
    %40 = vector.shape_cast %37 : vector<16x16xf32> to vector<1x1x16x16xf32>
    tpu.vector_store %arg19[%c0_20, %c0_21, %c0_22, %c0_23], %40 {strides = array<i32>} : memref<1x1x16x32xf32, #tpu.memory_space<vmem>>, vector<1x1x16x16xf32>,
    %41 = arith.truncf %37 : vector<16x16xf32> to vector<16x16xbf16>
    %42 = arith.truncf %20 : vector<16x64xf32> to vector<16x64xbf16>
    %cst_24 = arith.constant dense<0.000000e+00> : vector<16x64xf32>
    %43 = tpu.matmul %41, %42, %cst_24 {dimension_numbers = #tpu.dot_dimension_numbers<[1], [0], [0], [1], [0, 0, 1, 1], [], []>} : vector<16x16xbf16>, vector<16x64xbf16>, vector<16x64xf32> -> vector<16x64xf32>
    %44 = vector.extract_strided_slice %16 {offsets = [0, 0], sizes = [64, 128], strides = [1, 1]} : vector<128x128xbf16> to vector<64x128xbf16>
    %45 = arith.truncf %43 : vector<16x64xf32> to vector<16x64xbf16>
    %cst_25 = arith.constant dense<0.000000e+00> : vector<16x128xf32>
    %46 = tpu.matmul %45, %44, %cst_25 {dimension_numbers = #tpu.dot_dimension_numbers<[1], [0], [0], [1], [0, 0, 1, 1], [], []>} : vector<16x64xbf16>, vector<64x128xbf16>, vector<16x128xf32> -> vector<16x128xf32>
    %47 = arith.addf %17, %46 : vector<16x128xf32>
    %48 = vector.extract_strided_slice %14 {offsets = [0, 64], sizes = [16, 64], strides = [1, 1]} : vector<16x384xf32> to vector<16x64xf32>
    %49 = vector.extract_strided_slice %14 {offsets = [0, 192], sizes = [16, 64], strides = [1, 1]} : vector<16x384xf32> to vector<16x64xf32>
    %50 = vector.extract_strided_slice %14 {offsets = [0, 320], sizes = [16, 64], strides = [1, 1]} : vector<16x384xf32> to vector<16x64xf32>
    %51 = arith.truncf %48 : vector<16x64xf32> to vector<16x64xbf16>
    %52 = arith.truncf %49 : vector<16x64xf32> to vector<16x64xbf16>
    %cst_26 = arith.constant dense<0.000000e+00> : vector<16x16xf32>
    %53 = tpu.matmul %51, %52, %cst_26 {dimension_numbers = #tpu.dot_dimension_numbers<[1], [1], [0], [0], [0, 0, 1, 0], [], []>} : vector<16x64xbf16>, vector<16x64xbf16>, vector<16x16xf32> -> vector<16x16xf32>
    %cst_27 = arith.constant 1.250000e-01 : f32
    %54 = vector.broadcast %cst_27 : f32 to vector<16x16xf32>
    %55 = arith.mulf %53, %54 : vector<16x16xf32>
    %56 = vector.broadcast %6 : vector<1x16xf32> to vector<16x16xf32>
    %57 = arith.addf %55, %56 : vector<16x16xf32>
    %cst_28 = arith.constant dense<0xFF800000> : vector<16xf32>
    %58 = vector.multi_reduction <maximumf>, %57, %cst_28 [1] : vector<16x16xf32> to vector<16xf32>
    %59 = vector.shape_cast %58 : vector<16xf32> to vector<16x1xf32>
    %60 = vector.broadcast %59 : vector<16x1xf32> to vector<16x16xf32>
    %61 = arith.subf %57, %60 : vector<16x16xf32>
    %62 = math.exp %61 : vector<16x16xf32>
    %cst_29 = arith.constant dense<0.000000e+00> : vector<16xf32>
    %63 = vector.multi_reduction <add>, %62, %cst_29 [1] : vector<16x16xf32> to vector<16xf32>
    %64 = vector.shape_cast %63 : vector<16xf32> to vector<16x1xf32>
    %65 = tpu.reciprocal %64 {approx = true} : vector<16x1xf32> -> vector<16x1xf32>
    %66 = vector.broadcast %65 : vector<16x1xf32> to vector<16x16xf32>
    %67 = arith.mulf %62, %66 : vector<16x16xf32>
    %c0_30 = arith.constant 0 : index
    %c0_31 = arith.constant 0 : index
    %c0_32 = arith.constant 0 : index
    %c16 = arith.constant 16 : index
    %68 = vector.load %arg19[%c0_30, %c0_31, %c0_32, %c16] : memref<1x1x16x32xf32, #tpu.memory_space<vmem>>, vector<1x1x16x16xf32>
    %69 = vector.shape_cast %68 : vector<1x1x16x16xf32> to vector<16x16xf32>
    %70 = vector.shape_cast %67 : vector<16x16xf32> to vector<1x1x16x16xf32>
    tpu.vector_store %arg19[%c0_30, %c0_31, %c0_32, %c16], %70 {strides = array<i32>} : memref<1x1x16x32xf32, #tpu.memory_space<vmem>>, vector<1x1x16x16xf32>,
    %71 = arith.truncf %67 : vector<16x16xf32> to vector<16x16xbf16>
    %72 = arith.truncf %50 : vector<16x64xf32> to vector<16x64xbf16>
    %cst_33 = arith.constant dense<0.000000e+00> : vector<16x64xf32>
    %73 = tpu.matmul %71, %72, %cst_33 {dimension_numbers = #tpu.dot_dimension_numbers<[1], [0], [0], [1], [0, 0, 1, 1], [], []>} : vector<16x16xbf16>, vector<16x64xbf16>, vector<16x64xf32> -> vector<16x64xf32>
    %74 = vector.extract_strided_slice %16 {offsets = [64, 0], sizes = [64, 128], strides = [1, 1]} : vector<128x128xbf16> to vector<64x128xbf16>
    %75 = arith.truncf %73 : vector<16x64xf32> to vector<16x64xbf16>
    %cst_34 = arith.constant dense<0.000000e+00> : vector<16x128xf32>
    %76 = tpu.matmul %75, %74, %cst_34 {dimension_numbers = #tpu.dot_dimension_numbers<[1], [0], [0], [1], [0, 0, 1, 1], [], []>} : vector<16x64xbf16>, vector<64x128xbf16>, vector<16x128xf32> -> vector<16x128xf32>
    %77 = arith.addf %47, %76 : vector<16x128xf32>
    %c0_35 = arith.constant 0 : index
    %c0_36 = arith.constant 0 : index
    %c0_37 = arith.constant 0 : index
    %78 = vector.load %arg9[%c0_35, %c0_36, %c0_37] : memref<1x1x128xf32, #tpu.memory_space<vmem>>, vector<1x1x128xf32>
    %79 = vector.shape_cast %78 : vector<1x1x128xf32> to vector<1x128xf32>
    %80 = vector.broadcast %79 : vector<1x128xf32> to vector<16x128xf32>
    %81 = arith.addf %77, %80 : vector<16x128xf32>
    %82 = arith.addf %81, %4 : vector<16x128xf32>
    %c0_38 = arith.constant 0 : index
    %c0_39 = arith.constant 0 : index
    %c0_40 = arith.constant 0 : index
    %83 = vector.load %arg10[%c0_38, %c0_39, %c0_40] : memref<1x1x128xf32, #tpu.memory_space<vmem>>, vector<1x1x128xf32>
    %84 = vector.shape_cast %83 : vector<1x1x128xf32> to vector<1x128xf32>
    %c0_41 = arith.constant 0 : index
    %c0_42 = arith.constant 0 : index
    %c0_43 = arith.constant 0 : index
    %85 = vector.load %arg11[%c0_41, %c0_42, %c0_43] : memref<1x1x128xf32, #tpu.memory_space<vmem>>, vector<1x1x128xf32>
    %86 = vector.shape_cast %85 : vector<1x1x128xf32> to vector<1x128xf32>
    %cst_44 = arith.constant dense<0.000000e+00> : vector<16xf32>
    %87 = vector.multi_reduction <add>, %82, %cst_44 [1] : vector<16x128xf32> to vector<16xf32>
    %88 = vector.shape_cast %87 : vector<16xf32> to vector<16x1xf32>
    %cst_45 = arith.constant 1.280000e+02 : f32
    %89 = vector.broadcast %cst_45 : f32 to vector<16x1xf32>
    %90 = arith.divf %88, %89 : vector<16x1xf32>
    %91 = vector.broadcast %90 : vector<16x1xf32> to vector<16x128xf32>
    %92 = arith.subf %82, %91 : vector<16x128xf32>
    %93 = arith.mulf %92, %92 : vector<16x128xf32>
    %cst_46 = arith.constant dense<0.000000e+00> : vector<16xf32>
    %94 = vector.multi_reduction <add>, %93, %cst_46 [1] : vector<16x128xf32> to vector<16xf32>
    %95 = vector.shape_cast %94 : vector<16xf32> to vector<16x1xf32>
    %cst_47 = arith.constant 1.280000e+02 : f32
    %96 = vector.broadcast %cst_47 : f32 to vector<16x1xf32>
    %97 = arith.divf %95, %96 : vector<16x1xf32>
    %98 = vector.broadcast %90 : vector<16x1xf32> to vector<16x128xf32>
    %99 = arith.subf %82, %98 : vector<16x128xf32>
    %cst_48 = arith.constant 9.99999996E-13 : f32
    %100 = vector.broadcast %cst_48 : f32 to vector<16x1xf32>
    %101 = arith.addf %97, %100 : vector<16x1xf32>
    %102 = math.rsqrt %101 : vector<16x1xf32>
    %103 = vector.broadcast %102 : vector<16x1xf32> to vector<16x128xf32>
    %104 = arith.mulf %99, %103 : vector<16x128xf32>
    %105 = vector.broadcast %84 : vector<1x128xf32> to vector<16x128xf32>
    %106 = arith.mulf %104, %105 : vector<16x128xf32>
    %107 = vector.broadcast %86 : vector<1x128xf32> to vector<16x128xf32>
    %108 = arith.addf %106, %107 : vector<16x128xf32>
    %c0_49 = arith.constant 0 : index
    %c0_50 = arith.constant 0 : index
    %c0_51 = arith.constant 0 : index
    %109 = vector.load %arg12[%c0_49, %c0_50, %c0_51] : memref<1x128x512xbf16, #tpu.memory_space<vmem>>, vector<1x128x512xbf16>
    %110 = vector.shape_cast %109 : vector<1x128x512xbf16> to vector<128x512xbf16>
    %111 = arith.truncf %108 : vector<16x128xf32> to vector<16x128xbf16>
    %cst_52 = arith.constant dense<0.000000e+00> : vector<16x512xf32>
    %112 = tpu.matmul %111, %110, %cst_52 {dimension_numbers = #tpu.dot_dimension_numbers<[1], [0], [0], [1], [0, 0, 1, 1], [], []>} : vector<16x128xbf16>, vector<128x512xbf16>, vector<16x512xf32> -> vector<16x512xf32>
    %c0_53 = arith.constant 0 : index
    %c0_54 = arith.constant 0 : index
    %c0_55 = arith.constant 0 : index
    %113 = vector.load %arg13[%c0_53, %c0_54, %c0_55] : memref<1x1x512xf32, #tpu.memory_space<vmem>>, vector<1x1x512xf32>
    %114 = vector.shape_cast %113 : vector<1x1x512xf32> to vector<1x512xf32>
    %115 = vector.broadcast %114 : vector<1x512xf32> to vector<16x512xf32>
    %116 = arith.addf %112, %115 : vector<16x512xf32>
    %cst_56 = arith.constant 5.000000e-01 : f32
    %117 = vector.broadcast %cst_56 : f32 to vector<16x512xf32>
    %118 = arith.mulf %117, %116 : vector<16x512xf32>
    %cst_57 = arith.constant 4.471500e-02 : f32
    %119 = vector.broadcast %cst_57 : f32 to vector<16x512xf32>
    %120 = arith.mulf %119, %116 : vector<16x512xf32>
    %121 = arith.mulf %120, %116 : vector<16x512xf32>
    %122 = arith.mulf %121, %116 : vector<16x512xf32>
    %123 = arith.addf %116, %122 : vector<16x512xf32>
    %cst_58 = arith.constant 0.797884583 : f32
    %124 = vector.broadcast %cst_58 : f32 to vector<16x512xf32>
    %125 = arith.mulf %124, %123 : vector<16x512xf32>
    %126 = math.tanh %125 : vector<16x512xf32>
    %cst_59 = arith.constant 1.000000e+00 : f32
    %127 = vector.broadcast %cst_59 : f32 to vector<16x512xf32>
    %128 = arith.addf %127, %126 : vector<16x512xf32>
    %129 = arith.mulf %118, %128 : vector<16x512xf32>
    %c0_60 = arith.constant 0 : index
    %c0_61 = arith.constant 0 : index
    %c0_62 = arith.constant 0 : index
    %130 = vector.load %arg14[%c0_60, %c0_61, %c0_62] : memref<1x512x128xbf16, #tpu.memory_space<vmem>>, vector<1x512x128xbf16>
    %131 = vector.shape_cast %130 : vector<1x512x128xbf16> to vector<512x128xbf16>
    %132 = arith.truncf %129 : vector<16x512xf32> to vector<16x512xbf16>
    %cst_63 = arith.constant dense<0.000000e+00> : vector<16x128xf32>
    %133 = tpu.matmul %132, %131, %cst_63 {dimension_numbers = #tpu.dot_dimension_numbers<[1], [0], [0], [1], [0, 0, 1, 1], [], []>} : vector<16x512xbf16>, vector<512x128xbf16>, vector<16x128xf32> -> vector<16x128xf32>
    %c0_64 = arith.constant 0 : index
    %c0_65 = arith.constant 0 : index
    %c0_66 = arith.constant 0 : index
    %134 = vector.load %arg15[%c0_64, %c0_65, %c0_66] : memref<1x1x128xf32, #tpu.memory_space<vmem>>, vector<1x1x128xf32>
    %135 = vector.shape_cast %134 : vector<1x1x128xf32> to vector<1x128xf32>
    %136 = vector.broadcast %135 : vector<1x128xf32> to vector<16x128xf32>
    %137 = arith.addf %133, %136 : vector<16x128xf32>
    %138 = arith.addf %137, %108 : vector<16x128xf32>
    %c0_67 = arith.constant 0 : index
    %c0_68 = arith.constant 0 : index
    %c0_69 = arith.constant 0 : index
    %139 = vector.load %arg16[%c0_67, %c0_68, %c0_69] : memref<1x1x128xf32, #tpu.memory_space<vmem>>, vector<1x1x128xf32>
    %140 = vector.shape_cast %139 : vector<1x1x128xf32> to vector<1x128xf32>
    %c0_70 = arith.constant 0 : index
    %c0_71 = arith.constant 0 : index
    %c0_72 = arith.constant 0 : index
    %141 = vector.load %arg17[%c0_70, %c0_71, %c0_72] : memref<1x1x128xf32, #tpu.memory_space<vmem>>, vector<1x1x128xf32>
    %142 = vector.shape_cast %141 : vector<1x1x128xf32> to vector<1x128xf32>
    %cst_73 = arith.constant dense<0.000000e+00> : vector<16xf32>
    %143 = vector.multi_reduction <add>, %138, %cst_73 [1] : vector<16x128xf32> to vector<16xf32>
    %144 = vector.shape_cast %143 : vector<16xf32> to vector<16x1xf32>
    %cst_74 = arith.constant 1.280000e+02 : f32
    %145 = vector.broadcast %cst_74 : f32 to vector<16x1xf32>
    %146 = arith.divf %144, %145 : vector<16x1xf32>
    %147 = vector.broadcast %146 : vector<16x1xf32> to vector<16x128xf32>
    %148 = arith.subf %138, %147 : vector<16x128xf32>
    %149 = arith.mulf %148, %148 : vector<16x128xf32>
    %cst_75 = arith.constant dense<0.000000e+00> : vector<16xf32>
    %150 = vector.multi_reduction <add>, %149, %cst_75 [1] : vector<16x128xf32> to vector<16xf32>
    %151 = vector.shape_cast %150 : vector<16xf32> to vector<16x1xf32>
    %cst_76 = arith.constant 1.280000e+02 : f32
    %152 = vector.broadcast %cst_76 : f32 to vector<16x1xf32>
    %153 = arith.divf %151, %152 : vector<16x1xf32>
    %154 = vector.broadcast %146 : vector<16x1xf32> to vector<16x128xf32>
    %155 = arith.subf %138, %154 : vector<16x128xf32>
    %cst_77 = arith.constant 9.99999996E-13 : f32
    %156 = vector.broadcast %cst_77 : f32 to vector<16x1xf32>
    %157 = arith.addf %153, %156 : vector<16x1xf32>
    %158 = math.rsqrt %157 : vector<16x1xf32>
    %159 = vector.broadcast %158 : vector<16x1xf32> to vector<16x128xf32>
    %160 = arith.mulf %155, %159 : vector<16x128xf32>
    %161 = vector.broadcast %140 : vector<1x128xf32> to vector<16x128xf32>
    %162 = arith.mulf %160, %161 : vector<16x128xf32>
    %163 = vector.broadcast %142 : vector<1x128xf32> to vector<16x128xf32>
    %164 = arith.addf %162, %163 : vector<16x128xf32>
    %c0_78 = arith.constant 0 : index
    %c0_79 = arith.constant 0 : index
    %c0_80 = arith.constant 0 : index
    %165 = vector.load %arg18[%c0_78, %c0_79, %c0_80] : memref<1x16x128xf32, #tpu.memory_space<vmem>>, vector<1x16x128xf32>
    %166 = vector.shape_cast %165 : vector<1x16x128xf32> to vector<16x128xf32>
    %167 = vector.shape_cast %164 : vector<16x128xf32> to vector<1x16x128xf32>
    tpu.vector_store %arg18[%c0_78, %c0_79, %c0_80], %167 {strides = array<i32>} : memref<1x16x128xf32, #tpu.memory_space<vmem>>, vector<1x16x128xf32>,
    return
  }
  func.func @transform_0(%arg0: i32, %arg1: i32) -> (i32, i32, i32) {
    %c0_i32 = arith.constant 0 : i32
    %c0_i32_0 = arith.constant 0 : i32
    %c0_i32_1 = arith.constant 0 : i32
    return %arg0, %c0_i32, %c0_i32_0 : i32, i32, i32
  }
  func.func @transform_1(%arg0: i32, %arg1: i32) -> (i32, i32, i32) {
    %c0_i32 = arith.constant 0 : i32
    %c0_i32_0 = arith.constant 0 : i32
    %c0_i32_1 = arith.constant 0 : i32
    return %arg0, %c0_i32, %c0_i32_0 : i32, i32, i32
  }
  func.func @transform_2(%arg0: i32, %arg1: i32) -> (i32, i32) {
    %c0_i32 = arith.constant 0 : i32
    %c0_i32_0 = arith.constant 0 : i32
    %c0_i32_1 = arith.constant 0 : i32
    return %c0_i32, %c0_i32_0 : i32, i32
  }
  func.func @transform_3(%arg0: i32, %arg1: i32) -> (i32, i32) {
    %c0_i32 = arith.constant 0 : i32
    %c0_i32_0 = arith.constant 0 : i32
    %c0_i32_1 = arith.constant 0 : i32
    return %c0_i32, %c0_i32_0 : i32, i32
  }
  func.func @transform_4(%arg0: i32, %arg1: i32) -> (i32, i32, i32) {
    %c0_i32 = arith.constant 0 : i32
    %c0_i32_0 = arith.constant 0 : i32
    %c0_i32_1 = arith.constant 0 : i32
    return %arg1, %c0_i32, %c0_i32_0 : i32, i32, i32
  }
  func.func @transform_5(%arg0: i32, %arg1: i32) -> (i32, i32, i32) {
    %c0_i32 = arith.constant 0 : i32
    %c0_i32_0 = arith.constant 0 : i32
    %c0_i32_1 = arith.constant 0 : i32
    return %arg1, %c0_i32, %c0_i32_0 : i32, i32, i32
  }
  func.func @transform_6(%arg0: i32, %arg1: i32) -> (i32, i32, i32) {
    %c0_i32 = arith.constant 0 : i32
    %c0_i32_0 = arith.constant 0 : i32
    %c0_i32_1 = arith.constant 0 : i32
    return %arg1, %c0_i32, %c0_i32_0 : i32, i32, i32
  }
  func.func @transform_7(%arg0: i32, %arg1: i32) -> (i32, i32, i32) {
    %c0_i32 = arith.constant 0 : i32
    %c0_i32_0 = arith.constant 0 : i32
    %c0_i32_1 = arith.constant 0 : i32
    return %arg1, %c0_i32, %c0_i32_0 : i32, i32, i32
  }
  func.func @transform_8(%arg0: i32, %arg1: i32) -> (i32, i32, i32) {
    %c0_i32 = arith.constant 0 : i32
    %c0_i32_0 = arith.constant 0 : i32
    %c0_i32_1 = arith.constant 0 : i32
    return %arg1, %c0_i32, %c0_i32_0 : i32, i32, i32
  }
  func.func @transform_9(%arg0: i32, %arg1: i32) -> (i32, i32, i32) {
    %c0_i32 = arith.constant 0 : i32
    %c0_i32_0 = arith.constant 0 : i32
    %c0_i32_1 = arith.constant 0 : i32
    return %arg1, %c0_i32, %c0_i32_0 : i32, i32, i32
  }
  func.func @transform_10(%arg0: i32, %arg1: i32) -> (i32, i32, i32) {
    %c0_i32 = arith.constant 0 : i32
    %c0_i32_0 = arith.constant 0 : i32
    %c0_i32_1 = arith.constant 0 : i32
    return %arg1, %c0_i32, %c0_i32_0 : i32, i32, i32
  }
  func.func @transform_11(%arg0: i32, %arg1: i32) -> (i32, i32, i32) {
    %c0_i32 = arith.constant 0 : i32
    %c0_i32_0 = arith.constant 0 : i32
    %c0_i32_1 = arith.constant 0 : i32
    return %arg1, %c0_i32, %c0_i32_0 : i32, i32, i32
  }
  func.func @transform_12(%arg0: i32, %arg1: i32) -> (i32, i32, i32) {
    %c0_i32 = arith.constant 0 : i32
    %c0_i32_0 = arith.constant 0 : i32
    %c0_i32_1 = arith.constant 0 : i32
    return %arg1, %c0_i32, %c0_i32_0 : i32, i32, i32
  }
  func.func @transform_13(%arg0: i32, %arg1: i32) -> (i32, i32, i32) {
    %c0_i32 = arith.constant 0 : i32
    %c0_i32_0 = arith.constant 0 : i32
    %c0_i32_1 = arith.constant 0 : i32
    return %arg1, %c0_i32, %c0_i32_0 : i32, i32, i32
  }
  func.func @transform_14(%arg0: i32, %arg1: i32) -> (i32, i32, i32) {
    %c0_i32 = arith.constant 0 : i32
    %c0_i32_0 = arith.constant 0 : i32
    %c0_i32_1 = arith.constant 0 : i32
    return %arg1, %c0_i32, %c0_i32_0 : i32, i32, i32
  }
  func.func @transform_15(%arg0: i32, %arg1: i32) -> (i32, i32, i32) {
    %c0_i32 = arith.constant 0 : i32
    %c0_i32_0 = arith.constant 0 : i32
    %c0_i32_1 = arith.constant 0 : i32
    return %arg1, %c0_i32, %c0_i32_0 : i32, i32, i32
  }
  func.func @transform_16(%arg0: i32, %arg1: i32) -> (i32, i32, i32) {
    %c0_i32 = arith.constant 0 : i32
    %c0_i32_0 = arith.constant 0 : i32
    %c0_i32_1 = arith.constant 0 : i32
    return %arg0, %c0_i32, %c0_i32_0 : i32, i32, i32
  }
  func.func @transform_17(%arg0: i32, %arg1: i32) -> (i32, i32, i32, i32) {
    %c0_i32 = arith.constant 0 : i32
    %c0_i32_0 = arith.constant 0 : i32
    %c0_i32_1 = arith.constant 0 : i32
    return %arg1, %arg0, %c0_i32, %c0_i32_0 : i32, i32, i32, i32
  }
}

module attributes {stable_mosaic.version = 11 : i64} {
  func.func @_heads_kernel(%arg0: i32, %arg1: memref<2x128xf32, #tpu.memory_space<vmem>>, %arg2: memref<128x128xf32, #tpu.memory_space<vmem>>, %arg3: memref<1x128xf32, #tpu.memory_space<vmem>>, %arg4: memref<128x3xf32, #tpu.memory_space<vmem>>, %arg5: memref<1x3xf32, #tpu.memory_space<vmem>>, %arg6: memref<128x2xf32, #tpu.memory_space<vmem>>, %arg7: memref<1x2xf32, #tpu.memory_space<vmem>>, %arg8: memref<2x3xf32, #tpu.memory_space<vmem>>, %arg9: memref<2x2xf32, #tpu.memory_space<vmem>>, %arg10: memref<2x3xf32, #tpu.memory_space<vmem>>, %arg11: memref<2x2xf32, #tpu.memory_space<vmem>>, %arg12: memref<1x1xf32, #tpu.memory_space<vmem>>, %arg13: memref<1x1xf32, #tpu.memory_space<vmem>>) attributes {dimension_semantics = [#tpu.dimension_semantics<arbitrary>], iteration_bounds = array<i64: 1>, scalar_prefetch = 0 : i64, scratch_operands = 0 : i64, tpu.core_type = #tpu.core_type<tc>, window_params = [{pipeline_mode = #tpu.pipeline_mode<synchronous>, transform_indices = @transform_0, window_bounds = array<i64: 2, 128>}, {pipeline_mode = #tpu.pipeline_mode<synchronous>, transform_indices = @transform_1, window_bounds = array<i64: 128, 128>}, {pipeline_mode = #tpu.pipeline_mode<synchronous>, transform_indices = @transform_2, window_bounds = array<i64: 1, 128>}, {pipeline_mode = #tpu.pipeline_mode<synchronous>, transform_indices = @transform_3, window_bounds = array<i64: 128, 3>}, {pipeline_mode = #tpu.pipeline_mode<synchronous>, transform_indices = @transform_4, window_bounds = array<i64: 1, 3>}, {pipeline_mode = #tpu.pipeline_mode<synchronous>, transform_indices = @transform_5, window_bounds = array<i64: 128, 2>}, {pipeline_mode = #tpu.pipeline_mode<synchronous>, transform_indices = @transform_6, window_bounds = array<i64: 1, 2>}, {pipeline_mode = #tpu.pipeline_mode<synchronous>, transform_indices = @transform_7, window_bounds = array<i64: 2, 3>}, {pipeline_mode = #tpu.pipeline_mode<synchronous>, transform_indices = @transform_8, window_bounds = array<i64: 2, 2>}, {pipeline_mode = #tpu.pipeline_mode<synchronous>, transform_indices = @transform_9, window_bounds = array<i64: 2, 3>}, {pipeline_mode = #tpu.pipeline_mode<synchronous>, transform_indices = @transform_10, window_bounds = array<i64: 2, 2>}, {pipeline_mode = #tpu.pipeline_mode<synchronous>, transform_indices = @transform_11, window_bounds = array<i64: 1, 1>}, {pipeline_mode = #tpu.pipeline_mode<synchronous>, transform_indices = @transform_12, window_bounds = array<i64: 1, 1>}]} {
    %c0 = arith.constant 0 : index
    %c0_0 = arith.constant 0 : index
    %0 = vector.load %arg1[%c0, %c0_0] : memref<2x128xf32, #tpu.memory_space<vmem>>, vector<2x128xf32>
    %c0_1 = arith.constant 0 : index
    %c0_2 = arith.constant 0 : index
    %1 = vector.load %arg2[%c0_1, %c0_2] : memref<128x128xf32, #tpu.memory_space<vmem>>, vector<128x128xf32>
    %cst = arith.constant dense<0.000000e+00> : vector<2x128xf32>
    %2 = tpu.matmul %0, %1, %cst {dimension_numbers = #tpu.dot_dimension_numbers<[1], [0], [0], [1], [0, 0, 1, 1], [], []>} : vector<2x128xf32>, vector<128x128xf32>, vector<2x128xf32> -> vector<2x128xf32>
    %c0_3 = arith.constant 0 : index
    %c0_4 = arith.constant 0 : index
    %3 = vector.load %arg3[%c0_3, %c0_4] : memref<1x128xf32, #tpu.memory_space<vmem>>, vector<1x128xf32>
    %4 = vector.broadcast %3 : vector<1x128xf32> to vector<2x128xf32>
    %5 = arith.addf %2, %4 : vector<2x128xf32>
    %6 = math.tanh %5 : vector<2x128xf32>
    %c0_5 = arith.constant 0 : index
    %c0_6 = arith.constant 0 : index
    %7 = vector.load %arg4[%c0_5, %c0_6] : memref<128x3xf32, #tpu.memory_space<vmem>>, vector<128x3xf32>
    %cst_7 = arith.constant dense<0.000000e+00> : vector<2x3xf32>
    %8 = tpu.matmul %6, %7, %cst_7 {dimension_numbers = #tpu.dot_dimension_numbers<[1], [0], [0], [1], [0, 0, 1, 1], [], []>} : vector<2x128xf32>, vector<128x3xf32>, vector<2x3xf32> -> vector<2x3xf32>
    %c0_8 = arith.constant 0 : index
    %c0_9 = arith.constant 0 : index
    %9 = vector.load %arg5[%c0_8, %c0_9] : memref<1x3xf32, #tpu.memory_space<vmem>>, vector<1x3xf32>
    %10 = vector.broadcast %9 : vector<1x3xf32> to vector<2x3xf32>
    %11 = arith.addf %8, %10 : vector<2x3xf32>
    %c0_10 = arith.constant 0 : index
    %c0_11 = arith.constant 0 : index
    %12 = vector.load %arg6[%c0_10, %c0_11] : memref<128x2xf32, #tpu.memory_space<vmem>>, vector<128x2xf32>
    %cst_12 = arith.constant dense<0.000000e+00> : vector<2x2xf32>
    %13 = tpu.matmul %6, %12, %cst_12 {dimension_numbers = #tpu.dot_dimension_numbers<[1], [0], [0], [1], [0, 0, 1, 1], [], []>} : vector<2x128xf32>, vector<128x2xf32>, vector<2x2xf32> -> vector<2x2xf32>
    %c0_13 = arith.constant 0 : index
    %c0_14 = arith.constant 0 : index
    %14 = vector.load %arg7[%c0_13, %c0_14] : memref<1x2xf32, #tpu.memory_space<vmem>>, vector<1x2xf32>
    %15 = vector.broadcast %14 : vector<1x2xf32> to vector<2x2xf32>
    %16 = arith.addf %13, %15 : vector<2x2xf32>
    %c0_15 = arith.constant 0 : index
    %c0_16 = arith.constant 0 : index
    %17 = vector.load %arg10[%c0_15, %c0_16] : memref<2x3xf32, #tpu.memory_space<vmem>>, vector<2x3xf32>
    tpu.vector_store %arg10[%c0_15, %c0_16], %11 {strides = array<i32>} : memref<2x3xf32, #tpu.memory_space<vmem>>, vector<2x3xf32>,
    %c0_17 = arith.constant 0 : index
    %c0_18 = arith.constant 0 : index
    %18 = vector.load %arg11[%c0_17, %c0_18] : memref<2x2xf32, #tpu.memory_space<vmem>>, vector<2x2xf32>
    tpu.vector_store %arg11[%c0_17, %c0_18], %16 {strides = array<i32>} : memref<2x2xf32, #tpu.memory_space<vmem>>, vector<2x2xf32>,
    %c0_19 = arith.constant 0 : index
    %c0_20 = arith.constant 0 : index
    %19 = vector.load %arg8[%c0_19, %c0_20] : memref<2x3xf32, #tpu.memory_space<vmem>>, vector<2x3xf32>
    %cst_21 = arith.constant dense<0xFF800000> : vector<2xf32>
    %20 = vector.multi_reduction <maximumf>, %11, %cst_21 [1] : vector<2x3xf32> to vector<2xf32>
    %21 = vector.shape_cast %20 : vector<2xf32> to vector<2x1xf32>
    %22 = vector.broadcast %21 : vector<2x1xf32> to vector<2x3xf32>
    %23 = arith.subf %11, %22 : vector<2x3xf32>
    %24 = math.exp %23 : vector<2x3xf32>
    %cst_22 = arith.constant dense<0.000000e+00> : vector<2xf32>
    %25 = vector.multi_reduction <add>, %24, %cst_22 [1] : vector<2x3xf32> to vector<2xf32>
    %26 = vector.shape_cast %25 : vector<2xf32> to vector<2x1xf32>
    %27 = math.log %26 : vector<2x1xf32>
    %28 = arith.addf %27, %21 : vector<2x1xf32>
    %29 = arith.mulf %19, %11 : vector<2x3xf32>
    %cst_23 = arith.constant dense<0.000000e+00> : vector<2xf32>
    %30 = vector.multi_reduction <add>, %29, %cst_23 [1] : vector<2x3xf32> to vector<2xf32>
    %31 = vector.shape_cast %30 : vector<2xf32> to vector<2x1xf32>
    %32 = arith.subf %28, %31 : vector<2x1xf32>
    %33 = vector.shape_cast %32 : vector<2x1xf32> to vector<1x2x1xf32>
    %cst_24 = arith.constant dense<0.000000e+00> : vector<1xf32>
    %34 = vector.multi_reduction <add>, %33, %cst_24 [1, 2] : vector<1x2x1xf32> to vector<1xf32>
    %35 = vector.shape_cast %34 : vector<1xf32> to vector<1x1x1xf32>
    %36 = vector.extract %35[0, 0, 0] : f32 from vector<1x1x1xf32>
    %37 = vector.broadcast %36 : f32 to vector<1x1xf32>
    %cst_25 = arith.constant 2.000000e+00 : f32
    %38 = vector.broadcast %cst_25 : f32 to vector<1x1xf32>
    %39 = arith.divf %37, %38 : vector<1x1xf32>
    %c0_26 = arith.constant 0 : index
    %c0_27 = arith.constant 0 : index
    %40 = vector.load %arg12[%c0_26, %c0_27] : memref<1x1xf32, #tpu.memory_space<vmem>>, vector<1x1xf32>
    tpu.vector_store %arg12[%c0_26, %c0_27], %39 {strides = array<i32>} : memref<1x1xf32, #tpu.memory_space<vmem>>, vector<1x1xf32>,
    %c0_28 = arith.constant 0 : index
    %c0_29 = arith.constant 0 : index
    %41 = vector.load %arg9[%c0_28, %c0_29] : memref<2x2xf32, #tpu.memory_space<vmem>>, vector<2x2xf32>
    %cst_30 = arith.constant dense<0xFF800000> : vector<2xf32>
    %42 = vector.multi_reduction <maximumf>, %16, %cst_30 [1] : vector<2x2xf32> to vector<2xf32>
    %43 = vector.shape_cast %42 : vector<2xf32> to vector<2x1xf32>
    %44 = vector.broadcast %43 : vector<2x1xf32> to vector<2x2xf32>
    %45 = arith.subf %16, %44 : vector<2x2xf32>
    %46 = math.exp %45 : vector<2x2xf32>
    %cst_31 = arith.constant dense<0.000000e+00> : vector<2xf32>
    %47 = vector.multi_reduction <add>, %46, %cst_31 [1] : vector<2x2xf32> to vector<2xf32>
    %48 = vector.shape_cast %47 : vector<2xf32> to vector<2x1xf32>
    %49 = math.log %48 : vector<2x1xf32>
    %50 = arith.addf %49, %43 : vector<2x1xf32>
    %51 = arith.mulf %41, %16 : vector<2x2xf32>
    %cst_32 = arith.constant dense<0.000000e+00> : vector<2xf32>
    %52 = vector.multi_reduction <add>, %51, %cst_32 [1] : vector<2x2xf32> to vector<2xf32>
    %53 = vector.shape_cast %52 : vector<2xf32> to vector<2x1xf32>
    %54 = arith.subf %50, %53 : vector<2x1xf32>
    %55 = vector.shape_cast %54 : vector<2x1xf32> to vector<1x2x1xf32>
    %cst_33 = arith.constant dense<0.000000e+00> : vector<1xf32>
    %56 = vector.multi_reduction <add>, %55, %cst_33 [1, 2] : vector<1x2x1xf32> to vector<1xf32>
    %57 = vector.shape_cast %56 : vector<1xf32> to vector<1x1x1xf32>
    %58 = vector.extract %57[0, 0, 0] : f32 from vector<1x1x1xf32>
    %59 = vector.broadcast %58 : f32 to vector<1x1xf32>
    %cst_34 = arith.constant 2.000000e+00 : f32
    %60 = vector.broadcast %cst_34 : f32 to vector<1x1xf32>
    %61 = arith.divf %59, %60 : vector<1x1xf32>
    %c0_35 = arith.constant 0 : index
    %c0_36 = arith.constant 0 : index
    %62 = vector.load %arg13[%c0_35, %c0_36] : memref<1x1xf32, #tpu.memory_space<vmem>>, vector<1x1xf32>
    tpu.vector_store %arg13[%c0_35, %c0_36], %61 {strides = array<i32>} : memref<1x1xf32, #tpu.memory_space<vmem>>, vector<1x1xf32>,
    return
  }
  func.func @transform_0(%arg0: i32) -> (i32, i32) {
    %c0_i32 = arith.constant 0 : i32
    %c0_i32_0 = arith.constant 0 : i32
    %c0_i32_1 = arith.constant 0 : i32
    return %c0_i32, %c0_i32_0 : i32, i32
  }
  func.func @transform_1(%arg0: i32) -> (i32, i32) {
    %c0_i32 = arith.constant 0 : i32
    %c0_i32_0 = arith.constant 0 : i32
    %c0_i32_1 = arith.constant 0 : i32
    return %c0_i32, %c0_i32_0 : i32, i32
  }
  func.func @transform_2(%arg0: i32) -> (i32, i32) {
    %c0_i32 = arith.constant 0 : i32
    %c0_i32_0 = arith.constant 0 : i32
    %c0_i32_1 = arith.constant 0 : i32
    return %c0_i32, %c0_i32_0 : i32, i32
  }
  func.func @transform_3(%arg0: i32) -> (i32, i32) {
    %c0_i32 = arith.constant 0 : i32
    %c0_i32_0 = arith.constant 0 : i32
    %c0_i32_1 = arith.constant 0 : i32
    return %c0_i32, %c0_i32_0 : i32, i32
  }
  func.func @transform_4(%arg0: i32) -> (i32, i32) {
    %c0_i32 = arith.constant 0 : i32
    %c0_i32_0 = arith.constant 0 : i32
    %c0_i32_1 = arith.constant 0 : i32
    return %c0_i32, %c0_i32_0 : i32, i32
  }
  func.func @transform_5(%arg0: i32) -> (i32, i32) {
    %c0_i32 = arith.constant 0 : i32
    %c0_i32_0 = arith.constant 0 : i32
    %c0_i32_1 = arith.constant 0 : i32
    return %c0_i32, %c0_i32_0 : i32, i32
  }
  func.func @transform_6(%arg0: i32) -> (i32, i32) {
    %c0_i32 = arith.constant 0 : i32
    %c0_i32_0 = arith.constant 0 : i32
    %c0_i32_1 = arith.constant 0 : i32
    return %c0_i32, %c0_i32_0 : i32, i32
  }
  func.func @transform_7(%arg0: i32) -> (i32, i32) {
    %c0_i32 = arith.constant 0 : i32
    %c0_i32_0 = arith.constant 0 : i32
    %c0_i32_1 = arith.constant 0 : i32
    return %c0_i32, %c0_i32_0 : i32, i32
  }
  func.func @transform_8(%arg0: i32) -> (i32, i32) {
    %c0_i32 = arith.constant 0 : i32
    %c0_i32_0 = arith.constant 0 : i32
    %c0_i32_1 = arith.constant 0 : i32
    return %c0_i32, %c0_i32_0 : i32, i32
  }
  func.func @transform_9(%arg0: i32) -> (i32, i32) {
    %c0_i32 = arith.constant 0 : i32
    %c0_i32_0 = arith.constant 0 : i32
    %c0_i32_1 = arith.constant 0 : i32
    return %c0_i32, %c0_i32_0 : i32, i32
  }
  func.func @transform_10(%arg0: i32) -> (i32, i32) {
    %c0_i32 = arith.constant 0 : i32
    %c0_i32_0 = arith.constant 0 : i32
    %c0_i32_1 = arith.constant 0 : i32
    return %c0_i32, %c0_i32_0 : i32, i32
  }
  func.func @transform_11(%arg0: i32) -> (i32, i32) {
    %c0_i32 = arith.constant 0 : i32
    %c0_i32_0 = arith.constant 0 : i32
    %c0_i32_1 = arith.constant 0 : i32
    return %c0_i32, %c0_i32_0 : i32, i32
  }
  func.func @transform_12(%arg0: i32) -> (i32, i32) {
    %c0_i32 = arith.constant 0 : i32
    %c0_i32_0 = arith.constant 0 : i32
    %c0_i32_1 = arith.constant 0 : i32
    return %c0_i32, %c0_i32_0 : i32, i32
  }
}

</mosaic_0001>

<bundles_post_ra>
// kernel: squeeze.7
= control target key start
LH: loop header
LB: loop body
LE: loop exit
PB: predicated region body
PF: predicated region fallthrough
CT: control target
= control target key end

     0   :  { %vm3_vm0 = vcmask 130048   ;;  %s321_s12 = smov 112   ;;  %s456_s0 = inlined_call_operand.vmem [shape: f32[1,2,16,32], index: 0, kind: input, shape index: {}]   ;;  %s457_s1 = inlined_call_operand.vmem [shape: f32[2,16,2,16], index: 1, kind: output, shape index: {}]  }
   0x1   :  { %v287_v0 = vld [vmem:[%s456_s0 + $0x10] sm:$0xff]   ;;  %v27_v1 = vld [vmem:[%s456_s0] sm:$0xff]   ;;  %v288_v2 = vld [vmem:[%s456_s0 + $0x18] sm:$0xff]  }
   0x2   :  { %46 = vrot.lane.b32.xlu1 %v287_v0, %s321_s12  ;;  %28 = vrot.lane.b32.xlu0 %v27_v1, %s321_s12  ;;  %v286_v3 = vld [vmem:[%s456_s0 + $0x8] sm:$0xff]   ;;  %17 = vst.msk [vmem:[#allocation0 + $0x80] ss:$8 sm:$0xf] %vm3_vm0, %v287_v0  }
   0x3   :  { %19 = vst.msk [vmem:[#allocation0 + $0x80] ss:$8 sm:$0xf0] %vm3_vm0, %v287_v0   ;;  %4 = vst.msk [vmem:[#allocation0] ss:$8 sm:$0xf] %vm3_vm0, %v27_v1  }
   0x4   :  { %5 = vst.msk [vmem:[#allocation0] ss:$8 sm:$0xf0] %vm3_vm0, %v27_v1   ;;  %24 = vst.msk [vmem:[#allocation0 + $0xc0] ss:$8 sm:$0xf] %vm3_vm0, %v288_v2  }
   0x5   :  { %26 = vst.msk [vmem:[#allocation0 + $0xc0] ss:$8 sm:$0xf0] %vm3_vm0, %v288_v2   ;;  %10 = vst.msk [vmem:[#allocation0 + $0x40] ss:$8 sm:$0xf] %vm3_vm0, %v286_v3  }
   0x6   :  { %12 = vst.msk [vmem:[#allocation0 + $0x40] ss:$8 sm:$0xf0] %vm3_vm0, %v286_v3   ;;  %55 = vrot.lane.b32.xlu1 %v288_v2, %s321_s12  ;;  %37 = vrot.lane.b32.xlu0 %v286_v3, %s321_s12 }
  0x74   :  { %v47_v4 = vpop.permute.xlu1 %46   ;;  %v29_v5 = vpop.permute.xlu0 %28  }
  0x75   :  { %50 = vst.msk [vmem:[#allocation0 + $0x81] ss:$8 sm:$0xf] %vm3_vm0, %v47_v4   ;;  %52 = vst.msk [vmem:[#allocation0 + $0x81] ss:$8 sm:$0xf0] %vm3_vm0, %v47_v4  }
  0x76   :  { %32 = vst.msk [vmem:[#allocation0 + $0x1] ss:$8 sm:$0xf] %vm3_vm0, %v29_v5   ;;  %34 = vst.msk [vmem:[#allocation0 + $0x1] ss:$8 sm:$0xf0] %vm3_vm0, %v29_v5  }
  0x78   :  { %v56_v6 = vpop.permute.xlu1 %55   ;;  %v38_v7 = vpop.permute.xlu0 %37  }
  0x79   :  { %59 = vst.msk [vmem:[#allocation0 + $0xc1] ss:$8 sm:$0xf] %vm3_vm0, %v56_v6   ;;  %61 = vst.msk [vmem:[#allocation0 + $0xc1] ss:$8 sm:$0xf0] %vm3_vm0, %v56_v6  }
  0x7a   :  { %41 = vst.msk [vmem:[#allocation0 + $0x41] ss:$8 sm:$0xf] %vm3_vm0, %v38_v7   ;;  %43 = vst.msk [vmem:[#allocation0 + $0x41] ss:$8 sm:$0xf0] %vm3_vm0, %v38_v7  }
  0x7c   :  { %v158_v8 = vld [vmem:[#allocation0 + $0x80] sm:$0x3]  ;;  %v164_v9 = vld [vmem:[#allocation0 + $0x88] sm:$0x3]  ;;  %v170_v10 = vld [vmem:[#allocation0 + $0x90] sm:$0x3] }
  0x7d   :  { %304 = vst [vmem:[%s457_s1 + $0x20] sm:$0x3] %v158_v8  ;;  %305 = vst [vmem:[%s457_s1 + $0x22] sm:$0x3] %v164_v9  ;;  %v176_v11 = vld [vmem:[#allocation0 + $0x98] sm:$0x3] }
  0x7e   :  { %306 = vst [vmem:[%s457_s1 + $0x24] sm:$0x3] %v170_v10  ;;  %v182_v12 = vld [vmem:[#allocation0 + $0xa0] sm:$0x3]  ;;  %v188_v13 = vld [vmem:[#allocation0 + $0xa8] sm:$0x3] }
  0x7f   :  { %307 = vst [vmem:[%s457_s1 + $0x26] sm:$0x3] %v176_v11  ;;  %308 = vst [vmem:[%s457_s1 + $0x28] sm:$0x3] %v182_v12  ;;  %v194_v14 = vld [vmem:[#allocation0 + $0xb0] sm:$0x3] }
  0x80   :  { %309 = vst [vmem:[%s457_s1 + $0x2a] sm:$0x3] %v188_v13  ;;  %v200_v15 = vld [vmem:[#allocation0 + $0xb8] sm:$0x3]  ;;  %v65_v16 = vld [vmem:[#allocation0] sm:$0x3] }
  0x81   :  { %310 = vst [vmem:[%s457_s1 + $0x2c] sm:$0x3] %v194_v14  ;;  %311 = vst [vmem:[%s457_s1 + $0x2e] sm:$0x3] %v200_v15  ;;  %v69_v17 = vld [vmem:[#allocation0 + $0x8] sm:$0x3] }
  0x82   :  { %67 = vst [vmem:[%s457_s1] sm:$0x3] %v65_v16  ;;  %v74_v18 = vld [vmem:[#allocation0 + $0x10] sm:$0x3]  ;;  %v80_v19 = vld [vmem:[#allocation0 + $0x18] sm:$0x3] }
  0x83   :  { %289 = vst [vmem:[%s457_s1 + $0x2] sm:$0x3] %v69_v17  ;;  %290 = vst [vmem:[%s457_s1 + $0x4] sm:$0x3] %v74_v18  ;;  %v86_v20 = vld [vmem:[#allocation0 + $0x20] sm:$0x3] }
  0x84   :  { %291 = vst [vmem:[%s457_s1 + $0x6] sm:$0x3] %v80_v19  ;;  %v92_v21 = vld [vmem:[#allocation0 + $0x28] sm:$0x3]  ;;  %v98_v22 = vld [vmem:[#allocation0 + $0x30] sm:$0x3] }
  0x85   :  { %292 = vst [vmem:[%s457_s1 + $0x8] sm:$0x3] %v86_v20  ;;  %293 = vst [vmem:[%s457_s1 + $0xa] sm:$0x3] %v92_v21  ;;  %v104_v23 = vld [vmem:[#allocation0 + $0x38] sm:$0x3] }
  0x86   :  { %294 = vst [vmem:[%s457_s1 + $0xc] sm:$0x3] %v98_v22  ;;  %v206_v24 = vld [vmem:[#allocation0 + $0xc0] sm:$0x3]  ;;  %v212_v25 = vld [vmem:[#allocation0 + $0xc8] sm:$0x3] }
  0x87   :  { %295 = vst [vmem:[%s457_s1 + $0xe] sm:$0x3] %v104_v23  ;;  %312 = vst [vmem:[%s457_s1 + $0x30] sm:$0x3] %v206_v24  ;;  %v218_v26 = vld [vmem:[#allocation0 + $0xd0] sm:$0x3] }
  0x88   :  { %313 = vst [vmem:[%s457_s1 + $0x32] sm:$0x3] %v212_v25  ;;  %v224_v27 = vld [vmem:[#allocation0 + $0xd8] sm:$0x3]  ;;  %v230_v28 = vld [vmem:[#allocation0 + $0xe0] sm:$0x3] }
  0x89   :  { %314 = vst [vmem:[%s457_s1 + $0x34] sm:$0x3] %v218_v26  ;;  %315 = vst [vmem:[%s457_s1 + $0x36] sm:$0x3] %v224_v27  ;;  %v236_v29 = vld [vmem:[#allocation0 + $0xe8] sm:$0x3] }
  0x8a   :  { %316 = vst [vmem:[%s457_s1 + $0x38] sm:$0x3] %v230_v28  ;;  %v242_v30 = vld [vmem:[#allocation0 + $0xf0] sm:$0x3]  ;;  %v248_v31 = vld [vmem:[#allocation0 + $0xf8] sm:$0x3] }
  0x8b   :  { %317 = vst [vmem:[%s457_s1 + $0x3a] sm:$0x3] %v236_v29  ;;  %318 = vst [vmem:[%s457_s1 + $0x3c] sm:$0x3] %v242_v30  ;;  %v110_v32 = vld [vmem:[#allocation0 + $0x40] sm:$0x3] }
  0x8c   :  { %319 = vst [vmem:[%s457_s1 + $0x3e] sm:$0x3] %v248_v31  ;;  %v116_v33 = vld [vmem:[#allocation0 + $0x48] sm:$0x3]  ;;  %v122_v34 = vld [vmem:[#allocation0 + $0x50] sm:$0x3] }
  0x8d   :  { %296 = vst [vmem:[%s457_s1 + $0x10] sm:$0x3] %v110_v32  ;;  %297 = vst [vmem:[%s457_s1 + $0x12] sm:$0x3] %v116_v33  ;;  %v128_v35 = vld [vmem:[#allocation0 + $0x58] sm:$0x3] }
  0x8e   :  { %298 = vst [vmem:[%s457_s1 + $0x14] sm:$0x3] %v122_v34  ;;  %v134_v36 = vld [vmem:[#allocation0 + $0x60] sm:$0x3]  ;;  %v140_v37 = vld [vmem:[#allocation0 + $0x68] sm:$0x3] }
  0x8f   :  { %299 = vst [vmem:[%s457_s1 + $0x16] sm:$0x3] %v128_v35  ;;  %300 = vst [vmem:[%s457_s1 + $0x18] sm:$0x3] %v134_v36  ;;  %v146_v38 = vld [vmem:[#allocation0 + $0x70] sm:$0x3] }
  0x90   :  { %301 = vst [vmem:[%s457_s1 + $0x1a] sm:$0x3] %v140_v37  ;;  %v152_v39 = vld [vmem:[#allocation0 + $0x78] sm:$0x3]  ;;  %302 = vst [vmem:[%s457_s1 + $0x1c] sm:$0x3] %v146_v38 }
  0x91   :  { %303 = vst [vmem:[%s457_s1 + $0x1e] sm:$0x3] %v152_v39 }

// kernel: bert_dann_forward.3
= control target key start
LH: loop header
LB: loop body
LE: loop exit
PB: predicated region body
PF: predicated region fallthrough
CT: control target
= control target key end

     0   :  { %18 = vsyncpa [#allocation3], 0  ;;  %s1112_s0 = inlined_call_operand.vmem [shape: f32[2,128], index: 0, kind: input, shape index: {}]   ;;  %s1113_s1 = inlined_call_operand.vmem [shape: f32[128,128], index: 1, kind: input, shape index: {}]   ;;  %s1114_s2 = inlined_call_operand.vmem [shape: f32[1,128], index: 2, kind: input, shape index: {}]   ;;  %s1115_s3 = inlined_call_operand.vmem [shape: f32[128,3], index: 3, kind: input, shape index: {}]   ;;  %s1116_s4 = inlined_call_operand.vmem [shape: f32[1,3], index: 4, kind: input, shape index: {}]   ;;  %s1117_s5 = inlined_call_operand.vmem [shape: f32[128,2], index: 5, kind: input, shape index: {}]   ;;  %s1118_s6 = inlined_call_operand.vmem [shape: f32[1,2], index: 6, kind: input, shape index: {}]   ;;  %s1119_s7 = inlined_call_operand.vmem [shape: f32[2,3], index: 7, kind: input, shape index: {}]   ;;  %s1120_s8 = inlined_call_operand.vmem [shape: f32[2,2], index: 8, kind: input, shape index: {}]   ;;  %s1121_s9 = inlined_call_operand.hbm [shape: f32[2,3], index: 9, kind: output, shape index: {0}]   ;;  %s1122_s10 = inlined_call_operand.hbm [shape: f32[2,2], index: 10, kind: output, shape index: {1}]   ;;  %s1123_s11 = inlined_call_operand.hbm [shape: f32[1,1], index: 11, kind: output, shape index: {2}]   ;;  %s1124_s12 = inlined_call_operand.hbm [shape: f32[1,1], index: 12, kind: output, shape index: {3}]  }
   0x1   :  { %19 = vsyncpa [#allocation5], 0  ;;  %v40_v0 = vld [vmem:[%s1113_s1] sm:$0xff]  ;;  %v41_v1 = vld [vmem:[%s1113_s1 + $0x8] sm:$0xff]  ;;  %v790_v3 = vmov 0.0|0.0   ;;  %vm791_vm0 = vmmov 0  }
   0x2   :  { %v42_v2 = vld [vmem:[%s1113_s1 + $0x10] sm:$0xff]  ;;  %603 = vmatprep.subr.bf16.mxu0 %v790_v3  ;;  %v604_v4 = vpack.c.bf16 %v41_v1, %v40_v0  ;;  %v43_v5 = vld [vmem:[%s1113_s1 + $0x18] sm:$0xff]  ;;  %v792_v6 = vmov 0.0   ;;  %627 = vmatprep.subr.bf16.mxu1 %v790_v3  ;;  %v44_v8 = vld [vmem:[%s1113_s1 + $0x20] sm:$0xff] }
   0x3   :  { %530 = vmatprep.mubr.msk.f32.mxu0 %vm791_vm0, %v792_v6  ;;  %565 = vmatprep.mubr.msk.f32.mxu1 %vm791_vm0, %v792_v6  ;;  %v607_v7 = vpack.c.bf16 %v43_v5, %v42_v2  ;;  %v45_v9 = vld [vmem:[%s1113_s1 + $0x28] sm:$0xff]  ;;  %v134_v10 = vld [vmem:[%s1115_s3] sm:$0xff]  ;;  %v136_v14 = vld [vmem:[%s1115_s3 + $0x10] sm:$0xff] }
   0x4   :  { %605 = vmatpush3.bf16.msra.mxu0 %v604_v4  ;;  %v135_v11 = vld [vmem:[%s1115_s3 + $0x8] sm:$0xff]  ;;  %v610_v12 = vpack.c.bf16 %v45_v9, %v44_v8  ;;  %v137_v15 = vld [vmem:[%s1115_s3 + $0x18] sm:$0xff]  ;;  %v46_v16 = vld [vmem:[%s1113_s1 + $0x30] sm:$0xff] }
   0x5   :  { %606 = vmatprep.subr.bf16.mxu0 %v790_v3  ;;  %v628_v13 = vpack.c.bf16 %v135_v11, %v134_v10  ;;  %v47_v17 = vld [vmem:[%s1113_s1 + $0x38] sm:$0xff]  ;;  %v631_v18 = vpack.c.bf16 %v137_v15, %v136_v14  ;;  %v138_v19 = vld [vmem:[%s1115_s3 + $0x20] sm:$0xff]  ;;  %v139_v20 = vld [vmem:[%s1115_s3 + $0x28] sm:$0xff] }
   0x6   :  { %v613_v21 = vpack.c.bf16 %v47_v17, %v46_v16  ;;  %v48_v22 = vld [vmem:[%s1113_s1 + $0x40] sm:$0xff]  ;;  %v49_v23 = vld [vmem:[%s1113_s1 + $0x48] sm:$0xff] }
   0x7   :  { %629 = vmatpush3.bf16.msra.mxu1 %v628_v13 }
   0x8   :  { %608 = vmatpush3.bf16.msra.mxu0 %v607_v7  ;;  %630 = vmatprep.subr.bf16.mxu1 %v790_v3 }
   0x9   :  { %609 = vmatprep.subr.bf16.mxu0 %v790_v3 }
   0xc   :  { %611 = vmatpush3.bf16.msra.mxu0 %v610_v12 }
   0xd   :  { %612 = vmatprep.subr.bf16.mxu0 %v790_v3 }
   0xe   :  { %20 = vsyncpa [#allocation8], 0  ;;  %632 = vmatpush3.bf16.msra.mxu1 %v631_v18  ;;  %v634_v24 = vpack.c.bf16 %v139_v20, %v138_v19  ;;  %v140_v25 = vld [vmem:[%s1115_s3 + $0x30] sm:$0xff]  ;;  %v141_v26 = vld [vmem:[%s1115_s3 + $0x38] sm:$0xff]  ;;  %v616_v27 = vpack.c.bf16 %v49_v23, %v48_v22  ;;  %vm320_vm1 = vcmask 17408   ;;  %vm322_vm2 = vcmask 9216  }
   0xf   :  { %633 = vmatprep.subr.bf16.mxu1 %v790_v3  ;;  %v50_v28 = vld [vmem:[%s1113_s1 + $0x50] sm:$0xff]  ;;  %v51_v29 = vld [vmem:[%s1113_s1 + $0x58] sm:$0xff]  ;;  %v637_v30 = vpack.c.bf16 %v141_v26, %v140_v25  ;;  %v142_v31 = vld [vmem:[%s1115_s3 + $0x40] sm:$0xff]  ;;  %vm342_vm3 = vcmask 1024   ;;  %s794_s28 = smov [#allocation2]  }
  0x10   :  { %614 = vmatpush3.bf16.msra.mxu0 %v613_v21  ;;  %v143_v32 = vld [vmem:[%s1115_s3 + $0x48] sm:$0xff]  ;;  %v619_v33 = vpack.c.bf16 %v51_v29, %v50_v28  ;;  %v52_v34 = vld [vmem:[%s1113_s1 + $0x60] sm:$0xff]  ;;  %v54_v38 = vld [vmem:[%s1113_s1 + $0x70] sm:$0xff]  ;;  %s395_s29 = sshll.u32 %s794_s28, 4  ;;  %s396_s29 = int_to_ptr.vmem [resolvable:$true] %s395_s29 }
  0x11   :  { %615 = vmatprep.subr.bf16.mxu0 %v790_v3  ;;  %v53_v35 = vld [vmem:[%s1113_s1 + $0x68] sm:$0xff]  ;;  %v640_v36 = vpack.c.bf16 %v143_v32, %v142_v31  ;;  %v55_v39 = vld [vmem:[%s1113_s1 + $0x78] sm:$0xff]  ;;  %v227_v41 = vld [vmem:[%s1117_s5] sm:$0xff] }
  0x12   :  { %635 = vmatpush3.bf16.msra.mxu1 %v634_v24  ;;  %v622_v37 = vpack.c.bf16 %v53_v35, %v52_v34  ;;  %v625_v40 = vpack.c.bf16 %v55_v39, %v54_v38  ;;  %v228_v42 = vld [vmem:[%s1117_s5 + $0x8] sm:$0xff]  ;;  %v39_v43 = vld [vmem:[%s1112_s0] sm:$0x3]  ;;  %v229_v45 = vld [vmem:[%s1117_s5 + $0x10] sm:$0xff] }
  0x13   :  { %636 = vmatprep.subr.bf16.mxu1 %v790_v3  ;;  %v652_v44 = vpack.c.bf16 %v228_v42, %v227_v41  ;;  %v230_v46 = vld [vmem:[%s1117_s5 + $0x18] sm:$0xff]  ;;  %v231_v48 = vld [vmem:[%s1117_s5 + $0x20] sm:$0xff]  ;;  %v232_v49 = vld [vmem:[%s1117_s5 + $0x28] sm:$0xff] }
  0x14   :  { %617 = vmatpush3.bf16.msra.mxu0 %v616_v27  ;;  %v655_v47 = vpack.c.bf16 %v230_v46, %v229_v45  ;;  %v658_v50 = vpack.c.bf16 %v232_v49, %v231_v48  ;;  %v233_v51 = vld [vmem:[%s1117_s5 + $0x30] sm:$0xff]  ;;  %v234_v52 = vld [vmem:[%s1117_s5 + $0x38] sm:$0xff]  ;;  %v235_v54 = vld [vmem:[%s1117_s5 + $0x40] sm:$0xff] }
  0x15   :  { %618 = vmatprep.subr.bf16.mxu0 %v790_v3  ;;  %v661_v53 = vpack.c.bf16 %v234_v52, %v233_v51  ;;  %v236_v55 = vld [vmem:[%s1117_s5 + $0x48] sm:$0xff]  ;;  %v144_v57 = vld [vmem:[%s1115_s3 + $0x50] sm:$0xff]  ;;  %v145_v58 = vld [vmem:[%s1115_s3 + $0x58] sm:$0xff] }
  0x16   :  { %638 = vmatpush3.bf16.msra.mxu1 %v637_v30  ;;  %v664_v56 = vpack.c.bf16 %v236_v55, %v235_v54  ;;  %v237_v59 = vld [vmem:[%s1117_s5 + $0x50] sm:$0xff]  ;;  %v643_v60 = vpack.c.bf16 %v145_v58, %v144_v57  ;;  %v238_v61 = vld [vmem:[%s1117_s5 + $0x58] sm:$0xff]  ;;  %v146_v63 = vld [vmem:[%s1115_s3 + $0x60] sm:$0xff] }
  0x17   :  { %639 = vmatprep.subr.bf16.mxu1 %v790_v3  ;;  %v667_v62 = vpack.c.bf16 %v238_v61, %v237_v59  ;;  %v147_v0 = vld [vmem:[%s1115_s3 + $0x68] sm:$0xff]  ;;  %v239_v1 = vld [vmem:[%s1117_s5 + $0x60] sm:$0xff]  ;;  %v148_v5 = vld [vmem:[%s1115_s3 + $0x70] sm:$0xff] }
  0x18   :  { %620 = vmatpush3.bf16.msra.mxu0 %v619_v33  ;;  %v646_v2 = vpack.c.bf16 %v147_v0, %v146_v63  ;;  %v240_v4 = vld [vmem:[%s1117_s5 + $0x68] sm:$0xff]  ;;  %v241_v8 = vld [vmem:[%s1117_s5 + $0x70] sm:$0xff]  ;;  %v242_v9 = vld [vmem:[%s1117_s5 + $0x78] sm:$0xff] }
  0x19   :  { %621 = vmatprep.subr.bf16.mxu0 %v790_v3  ;;  %v670_v7 = vpack.c.bf16 %v240_v4, %v239_v1  ;;  %v673_v11 = vpack.c.bf16 %v242_v9, %v241_v8  ;;  %v444_v12 = vld [vmem:[%s1114_s2] ss:$0 sm:$0xff] }
  0x1a   :  { %641 = vmatpush3.bf16.msra.mxu1 %v640_v36  ;;  %v445_v17 = vld [vmem:[%s1116_s4] ss:$0 sm:$0xff] }
  0x1b   :  { %642 = vmatprep.subr.bf16.mxu1 %v790_v3  ;;  %v324_v25 = vld [vmem:[%s1119_s7] sm:$0x3] }
  0x1c   :  { %623 = vmatpush3.bf16.msra.mxu0 %v622_v37  ;;  %v358_v37 = vld [vmem:[%s1120_s8] sm:$0x3]  ;;  %s793_s8 = smov [#allocation4]  }
  0x1d   :  { %624 = vmatprep.subr.bf16.mxu0 %v790_v3  ;;  %s405_s0 = sshll.u32 %s793_s8, 4  ;;  %s406_s0 = int_to_ptr.vmem [resolvable:$true] %s405_s0 }
  0x1e   :  { %644 = vmatpush3.bf16.msra.mxu1 %v643_v60  ;;  %s696_s30 = scalar_lea.vmem %s406_s0, 32  ;;  %p701_p1 = scmp.lt.s32.totalorder %s406_s0, %s406_s0 }
  0x1f   :  { %645 = vmatprep.subr.bf16.mxu1 %v790_v3  ;;  %p697_p0 = scmp.ne.s32.totalorder %s406_s0, %s696_s30  ;;  %p702_p2 = scmp.lt.s32.totalorder %s696_s30, %s696_s30 }
  0x20   :  { %626 = vmatpush3.bf16.msra.mxu0 %v625_v40 }
  0x21   :  { %651 = vmatprep.subr.bf16.mxu0 %v790_v3  ;;  %p703_p3 = por %p702_p2, %p701_p1 }
  0x22   :  { %647 = vmatpush3.bf16.msra.mxu1 %v646_v2 }
  0x23   :  { %531 = vmatmul.mubr.f32.vlgmr.msra.gmra.mrb[0].mxu0 %v39_v43  ;;  %648 = vmatprep.subr.bf16.mxu1 %v790_v3  ;;  %p704_p4 = pnand %p703_p3, %p697_p0 }
  0x24   :  { %653 = vmatpush3.bf16.msra.mxu0 %v652_v44  ;;  %600 = vmatprep.mubr.msk.f32.mxu0 %vm791_vm0, %v792_v6  ;;  %v149_v6 = vld [vmem:[%s1115_s3 + $0x78] sm:$0xff] }
  0x25   :  { %654 = vmatprep.subr.bf16.mxu0 %v790_v3  ;;  %v649_v10 = vpack.c.bf16 %v149_v6, %v148_v5 }
  0x27   :  { %650 = vmatpush3.bf16.msra.mxu1 %v649_v10 }
  0x28   :  { %656 = vmatpush3.bf16.msra.mxu0 %v655_v47 }
  0x29   :  { %657 = vmatprep.subr.bf16.mxu0 %v790_v3 }
  0x2c   :  { %659 = vmatpush3.bf16.msra.mxu0 %v658_v50 }
  0x2d   :  { %660 = vmatprep.subr.bf16.mxu0 %v790_v3 }
  0x30   :  { %662 = vmatpush3.bf16.msra.mxu0 %v661_v53 }
  0x31   :  { %663 = vmatprep.subr.bf16.mxu0 %v790_v3 }
  0x34   :  { %665 = vmatpush3.bf16.msra.mxu0 %v664_v56 }
  0x35   :  { %666 = vmatprep.subr.bf16.mxu0 %v790_v3 }
  0x38   :  { %668 = vmatpush3.bf16.msra.mxu0 %v667_v62 }
  0x39   :  { %669 = vmatprep.subr.bf16.mxu0 %v790_v3 }
  0x3c   :  { %671 = vmatpush3.bf16.msra.mxu0 %v670_v7 }
  0x3d   :  { %672 = vmatprep.subr.bf16.mxu0 %v790_v3  ;;  %v446_v3 = vld [vmem:[%s1118_s6] ss:$0 sm:$0xff] }
  0x40   :  { %674 = vmatpush3.bf16.msra.mxu0 %v673_v11 }
  0xf6   :  { %v129_v13 = vpop.f32.mrb[0].mxu0 }
  0xf7   :  { %v130_v14 = vadd.f32 %v444_v12, %v129_v13  ;;  %v532_v15 = vpop.f32.mrb[1].mxu0 }
  0xf9   :  { %686 = vtanh.f32 %v130_v14 }
 0x103   :  { %v687_v16 = vpop.eup %686 }
 0x104   :  { %566 = vmatmul.mubr.f32.vlgmr.msra.gmra.mrb[0].mxu1 %v687_v16  ;;  %601 = vmatmul.mubr.f32.vlgmr.msra.gmra.mrb[2].mxu0 %v687_v16 }
 0x1d7   :  { %v223_v18 = vpop.f32.mrb[0].mxu1  ;;  %v316_v19 = vpop.f32.mrb[2].mxu0 }
 0x1d8   :  { %v224_v20 = vadd.f32 %v445_v17, %v223_v18  ;;  %v317_v21 = vadd.f32 %v446_v3, %v316_v19  ;;  %v567_v22 = vpop.f32.mrb[1].mxu1  ;;  %v602_v23 = vpop.f32.mrb[3].mxu0 }
 0x1da   :  { %v325_v24 = vsel %vm320_vm1, %v224_v20, -inf  ;;  %321 = vst.msk [vmem:[#allocation2] sm:$0x3] %vm320_vm1, %v224_v20  ;;  %v359_v26 = vsel %vm322_vm2, %v317_v21, -inf  ;;  %v337_v27 = vmul.f32 %v324_v25, %v224_v20  ;;  %v371_v40 = vmul.f32 %v358_v37, %v317_v21 }
 0x1db   :  { %323 = vst.msk [vmem:[#allocation4] sm:$0x3] %vm322_vm2, %v317_v21  ;;  %326 = vmax.xlane.f32.xlu0 %v325_v24 }
 0x1dc   :  { %v338_v28 = vsel %vm320_vm1, %v337_v27, 0.0  ;;  %v372_v41 = vsel %vm322_vm2, %v371_v40, 0.0 }
 0x1df   :  { %360 = vmax.xlane.f32.xlu0 %v359_v26 }
 0x1e3   :  { %339 = vadd.xlane.f32.xlu0 %v338_v28 }
 0x268   :  { %v327_v29 = vpop.xlane.xlu0 %326 }
 0x269   :  { %v328_v30 = vsub.f32 %v224_v20, %v327_v29 }
 0x26b   :  { %v329_v31 = vmul.f32 1.442695, %v328_v30 }
 0x26c   :  { %v361_v32 = vpop.xlane.xlu0 %360 }
 0x26d   :  { %688 = vpow2.f32 %v329_v31  ;;  %v362_v33 = vsub.f32 %v317_v21, %v361_v32 }
 0x26f   :  { %v363_v34 = vmul.f32 1.442695, %v362_v33 }
 0x270   :  { %v340_v48 = vpop.xlane.xlu0 %339 }
 0x271   :  { %690 = vpow2.f32 %v363_v34 }
 0x277   :  { %v689_v35 = vpop.eup %688 }
 0x278   :  { %v331_v36 = vsel %vm320_vm1, %v689_v35, 0.0 }
 0x279   :  { %332 = vadd.xlane.f32.xlu1 %v331_v36 }
 0x27b   :  { %v691_v38 = vpop.eup %690 }
 0x27c   :  { %v365_v39 = vsel %vm322_vm2, %v691_v38, 0.0 }
 0x27d   :  { %366 = vadd.xlane.f32.xlu1 %v365_v39 }
 0x281   :  { %373 = vadd.xlane.f32.xlu1 %v372_v41 }
 0x306   :  { %v333_v42 = vpop.xlane.xlu1 %332 }
 0x307   :  { %692 = vlog2.f32 %v333_v42 }
 0x30a   :  { %v367_v43 = vpop.xlane.xlu1 %366 }
 0x30b   :  { %694 = vlog2.f32 %v367_v43 }
 0x30e   :  { %v374_v53 = vpop.xlane.xlu1 %373 }
 0x311   :  { %v693_v44 = vpop.eup %692 }
 0x312   :  { %v335_v45 = vmul.f32 0.6931472, %v693_v44 }
 0x314   :  { %v336_v46 = vadd.f32 %v335_v45, %v327_v29 }
 0x315   :  { %v695_v47 = vpop.eup %694 }
 0x316   :  { %v369_v49 = vmul.f32 0.6931472, %v695_v47  ;;  %v341_v50 = vsub.f32 %v336_v46, %v340_v48 }
 0x318   :  { %v370_v51 = vadd.f32 %v369_v49, %v361_v32  ;;  %v343_v52 = vsel %vm342_vm3, %v341_v50, 0.0 }
 0x319   :  { %344 = vadd.xlane.f32.xlu0 %v343_v52 }
 0x31a   :  { %v375_v54 = vsub.f32 %v370_v51, %v374_v53 }
 0x31c   :  { %v376_v55 = vsel %vm342_vm3, %v375_v54, 0.0 }
 0x31d   :  { %377 = vadd.xlane.f32.xlu1 %v376_v55 }
 0x31e   :  { %707 = shalt.err (!%p704_p4)
}
 0x31f   :  { %s708_s15 = scalar_lea.hbm %s1122_s10, 32 }
 0x320   :  { %p709_p5 = scmp.ne.s32.totalorder %s1122_s10, %s708_s15  ;;  %p712_p6 = scmp.lt.u32.totalorder %s708_s15, %s1122_s10 }
 0x322   :  { %p714_p7 = pnand %p712_p6, %p709_p5 }
 0x324   :  { %717 = shalt.err (!%p714_p7)
}
 0x325   :  { %408 = dma.vmem_to_hbm [thread:$0]  %s406_s0, 32, %s1122_s10, [#allocation5]  }
 0x326   :  { %s718_s22 = scalar_lea.vmem %s396_s29, 32  ;;  %p723_p9 = scmp.lt.s32.totalorder %s396_s29, %s396_s29 }
 0x327   :  { %p719_p8 = scmp.ne.s32.totalorder %s396_s29, %s718_s22  ;;  %p724_p10 = scmp.lt.s32.totalorder %s718_s22, %s718_s22 }
 0x329   :  { %p725_p11 = por %p724_p10, %p723_p9 }
 0x32b   :  { %p726_p12 = pnand %p725_p11, %p719_p8 }
 0x32d   :  { %729 = shalt.err (!%p726_p12)
}
 0x32e   :  { %s730_s3 = scalar_lea.hbm %s1121_s9, 32 }
 0x32f   :  { %p731_p13 = scmp.ne.s32.totalorder %s1121_s9, %s730_s3  ;;  %p734_p0 = scmp.lt.u32.totalorder %s730_s3, %s1121_s9 }
 0x331   :  { %p736_p1 = pnand %p734_p0, %p731_p13 }
 0x333   :  { %739 = shalt.err (!%p736_p1)
}
 0x334   :  { %398 = dma.vmem_to_hbm [thread:$0]  %s396_s29, 32, %s1121_s9, [#allocation3]   ;;  %vm356_vm4 = vcmask 0  }
 0x335   :  { %s795_s2 = smov [#allocation6]   ;;  %s796_s9 = smov [#allocation7]  }
 0x336   :  { %s415_s4 = sshll.u32 %s795_s2, 4  ;;  %s425_s7 = sshll.u32 %s796_s9, 4  ;;  %s416_s4 = int_to_ptr.vmem [resolvable:$true] %s415_s4  ;;  %s426_s7 = int_to_ptr.vmem [resolvable:$true] %s425_s7 }
 0x337   :  { %s740_s0 = scalar_lea.vmem %s416_s4, 16  ;;  %s744_s28 = scalar_lea.vmem %s416_s4, 32 }
 0x338   :  { %p741_p2 = scmp.ne.s32.totalorder %s416_s4, %s740_s0  ;;  %p745_p3 = scmp.lt.s32.totalorder %s416_s4, %s416_s4 }
 0x339   :  { %p746_p4 = scmp.lt.s32.totalorder %s744_s28, %s740_s0 }
 0x33b   :  { %p747_p5 = por %p746_p4, %p745_p3 }
 0x33d   :  { %p748_p6 = pnand %p747_p5, %p741_p2 }
 0x3a6   :  { %v345_v56 = vpop.xlane.xlu0 %344 }
 0x3a7   :  { %v346_v57 = vrot.slane %v345_v56, 4 }
 0x3a9   :  { %v347_v58 = vadd.f32 %v346_v57, %v345_v56 }
 0x3aa   :  { %v378_v59 = vpop.xlane.xlu1 %377 }
 0x3ab   :  { %v348_v60 = vrot.slane %v347_v58, 2  ;;  %v379_v61 = vrot.slane %v378_v59, 4 }
 0x3ad   :  { %v380_v62 = vadd.f32 %v379_v61, %v378_v59  ;;  %v349_v63 = vadd.f32 %v348_v60, %v347_v58 }
 0x3af   :  { %v381_v0 = vrot.slane %v380_v62, 2  ;;  %v350_v1 = vrot.slane %v349_v63, 1 }
 0x3b1   :  { %v382_v2 = vadd.f32 %v381_v0, %v380_v62  ;;  %v351_v4 = vadd.f32 %v350_v1, %v349_v63 }
 0x3b3   :  { %675 = vpush %v351_v4  ;;  %v383_v5 = vrot.slane %v382_v2, 1 }
 0x3b5   :  { %v384_v6 = vadd.f32 %v383_v5, %v382_v2 }
 0x3b7   :  { %677 = vpush %v384_v6 }
 0x3e4   :  { %s676_s6 = spop %675 }
 0x3e5   :  { %v353_v7 = vstv %s676_s6 }
 0x3e6   :  { %v355_v8 = vmul.f32 0.5, %v353_v7 }
 0x3e8   :  { %s678_s8 = spop %677  ;;  %357 = vst.msk [vmem:[#allocation6] sm:$0x1] %vm356_vm4, %v355_v8 }
 0x3e9   :  { %v386_v9 = vstv %s678_s8 }
 0x3ea   :  { %751 = shalt.err (!%p748_p6)
}
 0x3eb   :  { %s752_s13 = scalar_lea.hbm %s1123_s11, 16 }
 0x3ec   :  { %p753_p7 = scmp.ne.s32.totalorder %s1123_s11, %s752_s13  ;;  %p756_p8 = scmp.lt.u32.totalorder %s752_s13, %s1123_s11 }
 0x3ee   :  { %p758_p9 = pnand %p756_p8, %p753_p7 }
 0x3f0   :  { %761 = shalt.err (!%p758_p9)
}
 0x3f1   :  { %418 = dma.vmem_to_hbm [thread:$0]  %s416_s4, 16, %s1123_s11, [#allocation5]   ;;  %v387_v10 = vmul.f32 0.5, %v386_v9 }
 0x3f2   :  { %s762_s20 = scalar_lea.vmem %s426_s7, 16  ;;  %s766_s21 = scalar_lea.vmem %s426_s7, 32 }
 0x3f3   :  { %388 = vst.msk [vmem:[#allocation7] sm:$0x1] %vm356_vm4, %v387_v10  ;;  %p763_p10 = scmp.ne.s32.totalorder %s426_s7, %s762_s20  ;;  %p767_p11 = scmp.lt.s32.totalorder %s426_s7, %s426_s7 }
 0x3f4   :  { %p768_p12 = scmp.lt.s32.totalorder %s766_s21, %s762_s20 }
 0x3f6   :  { %p769_p13 = por %p768_p12, %p767_p11 }
 0x3f8   :  { %p770_p0 = pnand %p769_p13, %p763_p10 }
 0x3fa   :  { %773 = shalt.err (!%p770_p0)
}
 0x3fb   :  { %s774_s24 = scalar_lea.hbm %s1124_s12, 16 }
 0x3fc   :  { %p775_p1 = scmp.ne.s32.totalorder %s1124_s12, %s774_s24  ;;  %p778_p2 = scmp.lt.u32.totalorder %s774_s24, %s1124_s12 }
 0x3fe   :  { %p780_p3 = pnand %p778_p2, %p775_p1 }
 0x400   :  { %783 = shalt.err (!%p780_p3)
}
 0x401   :  { %428 = dma.vmem_to_hbm [thread:$0]  %s426_s7, 16, %s1124_s12, [#allocation8]  }
 0x402   :  { %784 = dma.done.wait [#allocation3], 32  }
 0x403   :  { %785 = vsyncadd [#allocation3], 4294967264 }
 0x404   :  { %786 = dma.done.wait [#allocation5], 48  }
 0x405   :  { %787 = vsyncadd [#allocation5], 4294967248 }
 0x406   :  { %788 = dma.done.wait [#allocation8], 16  }
 0x407   :  { %789 = vsyncadd [#allocation8], 4294967280 }
 0x408   :  { %441 = vsyncpa [#allocation3], 1 }
 0x409   :  { %442 = vsyncpa [#allocation5], 1 }
 0x40a   :  { %443 = vsyncpa [#allocation8], 1 }

// kernel: bert_dann_forward.2
= control target key start
LH: loop header
LB: loop body
LE: loop exit
PB: predicated region body
PF: predicated region fallthrough
CT: control target
= control target key end

     0   :  { %s3231_s24 = smov 0   ;;  %s3233_s25 = smov 0   ;;  %s3677_s0 = inlined_call_operand.vmem [shape: f32[2,16,128], index: 0, kind: input, shape index: {}]   ;;  %s3678_s1 = inlined_call_operand.vmem [shape: f32[2,1,16], index: 1, kind: input, shape index: {}]   ;;  %s3679_s2 = inlined_call_operand.vmem [shape: f32[1,128], index: 2, kind: input, shape index: {}]   ;;  %s3680_s3 = inlined_call_operand.vmem [shape: f32[1,128], index: 3, kind: input, shape index: {}]   ;;  %s3681_s4 = inlined_call_operand.vmem [shape: bf16[2,128,384], index: 4, kind: input, shape index: {}]   ;;  %s3682_s5 = inlined_call_operand.vmem [shape: f32[2,1,384], index: 5, kind: input, shape index: {}]   ;;  %s3683_s6 = inlined_call_operand.vmem [shape: bf16[2,128,128], index: 6, kind: input, shape index: {}]   ;;  %s3684_s7 = inlined_call_operand.vmem [shape: f32[2,1,128], index: 7, kind: input, shape index: {}]   ;;  %s3685_s8 = inlined_call_operand.vmem [shape: f32[2,1,128], index: 8, kind: input, shape index: {}]   ;;  %s3686_s9 = inlined_call_operand.vmem [shape: f32[2,1,128], index: 9, kind: input, shape index: {}]   ;;  %s3687_s10 = inlined_call_operand.vmem [shape: bf16[2,128,512], index: 10, kind: input, shape index: {}]   ;;  %s3688_s11 = inlined_call_operand.vmem [shape: f32[2,1,512], index: 11, kind: input, shape index: {}]   ;;  %s3689_s12 = inlined_call_operand.vmem [shape: bf16[2,512,128], index: 12, kind: input, shape index: {}]   ;;  %s3690_s13 = inlined_call_operand.vmem [shape: f32[2,1,128], index: 13, kind: input, shape index: {}]   ;;  %s3691_s14 = inlined_call_operand.vmem [shape: f32[2,1,128], index: 14, kind: input, shape index: {}]   ;;  %s3692_s15 = inlined_call_operand.vmem [shape: f32[2,1,128], index: 15, kind: input, shape index: {}]   ;;  %s3693_s16 = inlined_call_operand.vmem [shape: f32[2,16,128], index: 16, kind: output, shape index: {0}]   ;;  %s3694_s17 = inlined_call_operand.vmem [shape: f32[2,2,16,32], index: 17, kind: output, shape index: {1}]  }
   0x1   :  { %3700 = sst [smem:[#allocation10_spill]] %s3677_s0  ;;  %s3235_s26 = smov 0  }
   0x2   :  { %3701 = sst [smem:[#allocation11_spill]] %s3678_s1  ;;  %s3237_s27 = smov 0  }
   0x3   :  { %3702 = sst [smem:[#allocation12_spill]] %s3679_s2  ;;  %s3239_s28 = smov 0  }
   0x4   :  { %3703 = sst [smem:[#allocation13_spill]] %s3680_s3 }
   0x5   :  { %3704 = sst [smem:[#allocation14_spill]] %s3681_s4 }
   0x6   :  { %3705 = sst [smem:[#allocation15_spill]] %s3682_s5 }
   0x7   :  { %3706 = sst [smem:[#allocation16_spill]] %s3683_s6 }
   0x8   :  { %3707 = sst [smem:[#allocation17_spill]] %s3685_s8 }
   0x9   :  { %3708 = sst [smem:[#allocation18_spill]] %s3686_s9 }
   0xa   :  { %3709 = sst [smem:[#allocation19_spill]] %s3687_s10 }
   0xb   :  { %3710 = sst [smem:[#allocation20_spill]] %s3688_s11 }
   0xc   :  { %3711 = sst [smem:[#allocation21_spill]] %s3689_s12 }
   0xd   :  { %3712 = sst [smem:[#allocation22_spill]] %s3691_s14 }
   0xe   :  { %3713 = sst [smem:[#allocation23_spill]] %s3692_s15 }
   0xf   :  { %3714 = sst [smem:[#allocation24_spill]] %s3693_s16 }
  0x10   :  { %3715 = sst [smem:[#allocation25_spill]] %s3694_s17 }
  0x11 LB: > { %3716 = sst [smem:[#allocation2_spill]] %s3118_s24  ;;  %s37_s29 = sadd.s32 1, %s3126_s26  ;;  %s3134_s28 = sphi %s3239_s28, %s28_s28   ;;  %s3130_s27 = sphi %s3237_s27, %s3757_s27   ;;  %s3126_s26 = sphi %s3235_s26, %s3756_s26   ;;  %s3122_s25 = sphi %s3233_s25, %s3755_s25   ;;  %s3118_s24 = sphi %s3231_s24, %s3754_s24  }
  0x12   : > { %3717 = sst [smem:[#allocation3_spill]] %s3126_s26  ;;  %s40_s0 = sadd.s32 1, %s3130_s27 }
  0x13   : > { %3718 = sst [smem:[#allocation4_spill]] %s3130_s27  ;;  %p38_p0 = scmp.ge.s32.totalorder %s37_s29, 2 }
  0x14   : > { %3719 = sst [smem:[#allocation5_spill]] %s3134_s28  ;;  %p2611_p1 = scmp.ge.s32.totalorder %s3134_s28, 1 }
  0x15   : > { %p618_p2 = scmp.lt.s32.totalorder %s3134_s28, 5  ;;  %s3759_s29 = smov (%p38_p0, %s37_s29), 0 }
  0x16   : > { %3720 = sst [smem:[#allocation6_spill]] %s3759_s29  ;;  %s3761_s0 = smov (!%p38_p0, %s40_s0), %s3130_s27 }
  0x17   : > { %p619_p3 = pnand %p2611_p1, %p618_p2  ;;  %p42_p4 = scmp.ge.s32.totalorder %s3761_s0, 2 }
  0x19   : > { %s3763_s0 = smov (%p42_p4, %s3761_s0), 0  ;;  %622 = sbr.rel (%p619_p3) target bundleno = 2815 (0xaff), region = 84 }
  0x1a   : > { %3721 = sst [smem:[#allocation7_spill]] %s3763_s0 }
  0x20   : > { %p728_p5 = scmp.lt.s32.totalorder %s3122_s25, 1  ;;  %p736_p6 = scmp.lt.s32.totalorder %s3118_s24, 1 }
  0x21   : > { %s3723_s0 = sld [smem:[#allocation10_spill]]  ;;  %s3724_s4 = sld [smem:[#allocation14_spill]] }
  0x22   : > { %s3765_s25 = smov (!%p728_p5, %s3122_s25), 1  ;;  %s3725_s6 = sld [smem:[#allocation16_spill]] }
  0x23   : > { %s3267_s30 = scalar_select %p736_p6, %s3118_s24, 1 }
  0x24   : > { %s2741_s18 = sshll.u32 %s3765_s25, 4  ;;  %s3726_s5 = sld [smem:[#allocation15_spill]] }
  0x25   : > { %s2885_s27 = smul.u32 192, %s3267_s30  ;;  %s2742_s28 = sshll.u32 %s3267_s30, 6 }
  0x26   : > { %s2886_s26 = smul.u32 3, %s3267_s30  ;;  %s2743_s16 = sshll.u32 %s3267_s30, 8 }
  0x27   : > { %s732_s29 = scalar_lea.vmem %s3723_s0, %s2741_s18  ;;  %s3283_s24 = scalar_lea.vmem %s3724_s4, %s2885_s27 }
  0x28   : > { %s3288_s19 = scalar_lea.vmem %s3725_s6, %s2742_s28  ;;  %s2619_s17 = sshll.u32 %s3267_s30, 2 }
  0x29   : > { %s3729_s10 = sld [smem:[#allocation19_spill]]  ;;  %s3730_s11 = sld [smem:[#allocation20_spill]] }
  0x2a   : > { %s3293_s0 = scalar_lea.vmem %s3726_s5, %s2886_s26  ;;  %s3732_s12 = sld [smem:[#allocation21_spill]] }
  0x2b   : > { %s3734_s5 = sld [smem:[#allocation22_spill]]  ;;  %s3735_s9 = sld [smem:[#allocation23_spill]] }
  0x2c   : > { %s2624_s21 = sshll.u32 %s3765_s25, 1  ;;  %s3737_s15 = sld [smem:[#allocation25_spill]] }
  0x2d   : > { %s3738_s27 = sld [smem:[#allocation2_spill]] }
  0x2f   : > { %s3312_s1 = scalar_lea.vmem %s3729_s10, %s2743_s16  ;;  %s3317_s22 = scalar_lea.vmem %s3730_s11, %s2619_s17 }
  0x30   : > { %3731 = sst [smem:[#allocation8_spill]] %s3317_s22  ;;  %s3322_s14 = scalar_lea.vmem %s3732_s12, %s2743_s16 }
  0x31   : > { %3733 = sst [smem:[#allocation9_spill]] %s3322_s14  ;;  %s778_s6 = scalar_lea.vmem %s3734_s5, %s3267_s30 }
  0x32   : > { %s781_s8 = scalar_lea.vmem %s3735_s9, %s3267_s30  ;;  %s3736_s11 = sld [smem:[#allocation24_spill]] }
  0x33   : > { %s793_s16 = sadd.s32 %s2624_s21, %s2619_s17  ;;  %p2627_p7 = scmp.ne.s32.totalorder %s3738_s27, 0 }
  0x34   : > { %s2626_s23 = sshll.u32 %s793_s16, 3  ;;  %v801_v0 = vld [vmem:[%s732_s29] sm:$0xff] (!%p2627_p7)  ;;  %v802_v1 = vld [vmem:[%s732_s29 + $0x8] sm:$0xff] (!%p2627_p7)  ;;  %s3739_s9 = sld [smem:[#allocation12_spill]] (!%p2627_p7) }
  0x35   : > { %s3345_s3 = scalar_lea.vmem %s3737_s15, %s2626_s23  ;;  %800 = sbr.rel (%p2627_p7) target bundleno = 369 (0x171), region = 88  ;;  %805 = vadd.xlane.f32.xlu0 (!%p2627_p7), %v801_v0 }
  0x36   : > { %s3740_s12 = sld [smem:[#allocation13_spill]] (!%p2627_p7) }
  0x38   : > { %s3339_s22 = scalar_lea.vmem %s3736_s11, %s2741_s18 }
  0x39   : > { %807 = vadd.xlane.f32.xlu0 (!%p2627_p7), %v802_v1 }
  0x3a   : > { %v2628_v17 = vld [vmem:[%s3739_s9] ss:$0 sm:$0xff] (!%p2627_p7) }
  0x3c   : > { %v2629_v19 = vld [vmem:[%s3740_s12] ss:$0 sm:$0xff] }
  0xc2   : > { %v806_v2 = vpop.xlane.xlu0 %805 }
  0xc3   : > { %v810_v3 = vmul.f32 0.0078125, %v806_v2 }
  0xc5   : > { %v812_v4 = vsub.f32 %v801_v0, %v810_v3 }
  0xc6   : > { %v808_v5 = vpop.xlane.xlu0 %807 }
  0xc7   : > { %v811_v6 = vmul.f32 0.0078125, %v808_v5  ;;  %v814_v7 = vmul.f32 %v812_v4, %v812_v4 }
  0xc9   : > { %v813_v8 = vsub.f32 %v802_v1, %v811_v6  ;;  %816 = vadd.xlane.f32.xlu1 %v814_v7 }
  0xcb   : > { %v815_v9 = vmul.f32 %v813_v8, %v813_v8 }
  0xcd   : > { %818 = vadd.xlane.f32.xlu1 %v815_v9 }
 0x156   : > { %v817_v10 = vpop.xlane.xlu1 %816 }
 0x157   : > { %v820_v11 = vmul.f32 0.0078125, %v817_v10 }
 0x159   : > { %v822_v12 = vadd.f32 1e-12, %v820_v11 }
 0x15a   : > { %v819_v13 = vpop.xlane.xlu1 %818 }
 0x15b   : > { %2932 = vrsqrt.f32 %v822_v12  ;;  %v821_v14 = vmul.f32 0.0078125, %v819_v13 }
 0x15d   : > { %v823_v15 = vadd.f32 1e-12, %v821_v14 }
 0x15f   : > { %2934 = vrsqrt.f32 %v823_v15 }
 0x165   : > { %v2933_v16 = vpop.eup %2932 }
 0x166   : > { %v826_v18 = vmul.f32 %v2933_v16, %v812_v4 }
 0x168   : > { %v834_v20 = vmul.f32 %v2628_v17, %v826_v18 }
 0x169   : > { %v2935_v21 = vpop.eup %2934 }
 0x16a   : > { %v842_v22 = vadd.f32 %v2629_v19, %v834_v20  ;;  %v827_v23 = vmul.f32 %v2935_v21, %v813_v8 }
 0x16c   : > { %844 = vst [vmem:[%s3339_s22] sm:$0xff] %v842_v22  ;;  %v835_v24 = vmul.f32 %v2628_v17, %v827_v23 }
 0x16e   : > { %v843_v25 = vadd.f32 %v2629_v19, %v835_v24 }
 0x170   : > { %845 = vst [vmem:[%s3339_s22 + $0x8] sm:$0xff] %v843_v25 }
 0x171 PF: > { %v2936_v26 = vld [vmem:[%s3283_s24 + $0x4] ss:$12 sps:$4 sm:$0xff]   ;;  %v2938_v27 = vld [vmem:[%s3283_s24] ss:$12 sps:$4 sm:$0xff]   ;;  %v3136_v28 = vmov 0   ;;  %v3137_v46 = vmov 0.0   ;;  %v884_v47 = vlaneseq  ;;  %s3750_s10 = scalar_lea.vmem %s3690_s13, %s3267_s30 }
 0x172   : > { %1059 = vmatprep.mubr.bf16.mxu0 %v3136_v28  ;;  %1027 = vmatprep.subr.bf16.mxu0 %v2936_v26  ;;  %v2939_v29 = vld [vmem:[%s3283_s24 + $0x1c] ss:$12 sps:$4 sm:$0xff]   ;;  %v2941_v30 = vld [vmem:[%s3283_s24 + $0x18] ss:$12 sps:$4 sm:$0xff]   ;;  %v2942_v31 = vld [vmem:[%s3283_s24 + $0x34] ss:$12 sps:$4 sm:$0xff]  }
 0x173   : > { %1028 = vmatpush1.bf16.msra.mxu0 %v2938_v27  ;;  %v2944_v32 = vld [vmem:[%s3283_s24 + $0x30] ss:$12 sps:$4 sm:$0xff]   ;;  %v2945_v33 = vld [vmem:[%s3283_s24 + $0x4c] ss:$12 sps:$4 sm:$0xff]   ;;  %v2947_v34 = vld [vmem:[%s3283_s24 + $0x48] ss:$12 sps:$4 sm:$0xff]   ;;  %2817 = vmatprep.subr.bf16.mxu1 %v3137_v46 }
 0x174   : > { %1029 = vmatprep.subr.bf16.mxu0 %v2939_v29  ;;  %v2948_v35 = vld [vmem:[%s3283_s24 + $0x64] ss:$12 sps:$4 sm:$0xff]   ;;  %v2950_v36 = vld [vmem:[%s3283_s24 + $0x60] ss:$12 sps:$4 sm:$0xff]   ;;  %v2951_v37 = vld [vmem:[%s3283_s24 + $0x7c] ss:$12 sps:$4 sm:$0xff]  }
 0x175   : > { %v2953_v38 = vld [vmem:[%s3283_s24 + $0x78] ss:$12 sps:$4 sm:$0xff]   ;;  %v2954_v39 = vld [vmem:[%s3283_s24 + $0x94] ss:$12 sps:$4 sm:$0xff]   ;;  %v2956_v40 = vld [vmem:[%s3283_s24 + $0x90] ss:$12 sps:$4 sm:$0xff]  }
 0x176   : > { %v2957_v41 = vld [vmem:[%s3283_s24 + $0xac] ss:$12 sps:$4 sm:$0xff]   ;;  %v2959_v42 = vld [vmem:[%s3283_s24 + $0xa8] ss:$12 sps:$4 sm:$0xff]   ;;  %v3374_v43 = vld [vmem:[%s3339_s22] sm:$0xff]  ;;  %vm3138_vm0 = vmmov 0  }
 0x177   : > { %1030 = vmatpush1.bf16.msra.mxu0 %v2941_v30  ;;  %v3377_v44 = vld [vmem:[%s3339_s22 + $0x8] sm:$0xff]  ;;  %2833 = vmatprep.mubr.msk.bf16.mxu1 %vm3138_vm0, %v3137_v46  ;;  %v3390_v48 = vshrl.u32 %v884_v47, 7  ;;  %v3394_v50 = vld [vmem:[%s3293_s0] sm:$0x7]  ;;  %vm1129_vm1 = vcmask 523264   ;;  %s3139_s29 = smov 64  }
 0x178   : > { %1031 = vmatprep.subr.bf16.mxu0 %v2942_v31  ;;  %v3381_v45 = vpack.c.bf16 %v3377_v44, %v3374_v43  ;;  %v2960_v1 = vld [vmem:[%s3283_s24 + $0x8] ss:$12 sps:$4 sm:$0xff]   ;;  %v2961_v2 = vld [vmem:[%s3283_s24 + $0x20] ss:$12 sps:$4 sm:$0xff]   ;;  %v2962_v3 = vld [vmem:[%s3283_s24 + $0x38] ss:$12 sps:$4 sm:$0xff]  }
 0x179   : > { %v886_v49 = vsub.s32 0, %v3390_v48  ;;  %v890_v51 = vsub.s32 1, %v3390_v48  ;;  %2818 = vmatpush3.bf16.msra.mxu1 %v2960_v1  ;;  %v2963_v4 = vld [vmem:[%s3283_s24 + $0x50] ss:$12 sps:$4 sm:$0xff]   ;;  %v2964_v7 = vld [vmem:[%s3283_s24 + $0x68] ss:$12 sps:$4 sm:$0xff]  }
 0x17a   : > { %2819 = vmatprep.subr.bf16.mxu1 %v3137_v46  ;;  %v2965_v8 = vld [vmem:[%s3283_s24 + $0x80] ss:$12 sps:$4 sm:$0xff]   ;;  %v2966_v10 = vld [vmem:[%s3283_s24 + $0x98] ss:$12 sps:$4 sm:$0xff]   ;;  %v2967_v11 = vld [vmem:[%s3283_s24 + $0xb0] ss:$12 sps:$4 sm:$0xff]  }
 0x17b   : > { %1032 = vmatpush1.bf16.msra.mxu0 %v2944_v32  ;;  %v887_v52 = vrot.slane %v3394_v50, %v886_v49  ;;  %v891_v54 = vrot.slane %v3394_v50, %v890_v51  ;;  %s3741_s2 = sld [smem:[#allocation11_spill]]  ;;  %vm1187_vm2 = vcmask 130048   ;;  %v894_v47 = vsub.s32 2, %v3390_v48  ;;  %s3140_s14 = smov 16  }
 0x17c   : > { %1033 = vmatprep.subr.bf16.mxu0 %v2945_v33  ;;  %vm1346_vm3 = vcmask 261248   ;;  %s3744_s27 = sld [smem:[#allocation9_spill]]  ;;  %s3745_s26 = sld [smem:[#allocation17_spill]] }
 0x17d   : > { %2820 = vmatpush3.bf16.msra.mxu1 %v2961_v2  ;;  %s3747_s23 = sld [smem:[#allocation18_spill]]  ;;  %s3749_s4 = sld [smem:[#allocation8_spill]] }
 0x17e   : > { %2821 = vmatprep.subr.bf16.mxu1 %v3137_v46 }
 0x17f   : > { %1034 = vmatpush1.bf16.msra.mxu0 %v2947_v34 }
 0x180   : > { %1035 = vmatprep.subr.bf16.mxu0 %v2948_v35 }
 0x181   : > { %2822 = vmatpush3.bf16.msra.mxu1 %v2962_v3  ;;  %s3742_s17 = scalar_lea.vmem %s3741_s2, %s3765_s25 }
 0x182   : > { %2823 = vmatprep.subr.bf16.mxu1 %v3137_v46  ;;  %v2655_v13 = vld [vmem:[%s3742_s17] ss:$0 sm:$0xff]  ;;  %s3746_s20 = scalar_lea.vmem %s3745_s26, %s3267_s30 }
 0x183   : > { %1036 = vmatpush1.bf16.msra.mxu0 %v2950_v36  ;;  %s3748_s15 = scalar_lea.vmem %s3747_s23, %s3267_s30 }
 0x184   : > { %1037 = vmatprep.subr.bf16.mxu0 %v2951_v37 }
 0x185   : > { %2824 = vmatpush3.bf16.msra.mxu1 %v2963_v4 }
 0x186   : > { %2825 = vmatprep.subr.bf16.mxu1 %v3137_v46 }
 0x187   : > { %1038 = vmatpush1.bf16.msra.mxu0 %v2953_v38 }
 0x188   : > { %1039 = vmatprep.subr.bf16.mxu0 %v2954_v39 }
 0x189   : > { %2826 = vmatpush3.bf16.msra.mxu1 %v2964_v7 }
 0x18a   : > { %2827 = vmatprep.subr.bf16.mxu1 %v3137_v46 }
 0x18b   : > { %1040 = vmatpush1.bf16.msra.mxu0 %v2956_v40 }
 0x18c   : > { %1041 = vmatprep.subr.bf16.mxu0 %v2957_v41 }
 0x18d   : > { %2828 = vmatpush3.bf16.msra.mxu1 %v2965_v8 }
 0x18e   : > { %2829 = vmatprep.subr.bf16.mxu1 %v3137_v46 }
 0x18f   : > { %1042 = vmatpush1.bf16.msra.mxu0 %v2959_v42 }
 0x190   : > { %2837 = vmatprep.subr.bf16.mxu0 %v3137_v46 }
 0x191   : > { %2830 = vmatpush3.bf16.msra.mxu1 %v2966_v10 }
 0x192   : > { %1060 = vmatmul.mubr.bf16.vlgmr.msra.gmra.mrb[0].mxu0 %v3381_v45  ;;  %2831 = vmatprep.subr.bf16.mxu1 %v3137_v46 }
 0x193   : > { %2839 = vmatprep.mubr.msk.bf16.mxu0 %vm3138_vm0, %v3137_v46 }
 0x195   : > { %2832 = vmatpush3.bf16.msra.mxu1 %v2967_v11 }
 0x196   : > { %2843 = vmatprep.subr.bf16.mxu1 %v3137_v46 }
 0x198   : > { %2834 = vmatmul.mubr.bf16.vlgmr.msra.gmra.mrb[0].mxu1 %v3381_v45 }
 0x199   : > { %2845 = vmatprep.mubr.msk.bf16.mxu1 %vm3138_vm0, %v3137_v46 }
 0x265   : > { %v1061_v53 = vpop.f32.mrb[0].mxu0 }
 0x266   : > { %v1063_v55 = vpop.f32.mrb[1].mxu0  ;;  %v1062_v57 = vadd.f32 %v1061_v53, %v887_v52 }
 0x267   : > { %v1065_v56 = vpop.f32.mrb[2].mxu0  ;;  %v1064_v60 = vadd.f32 %v1063_v55, %v891_v54 }
 0x268   : > { %v1066_v58 = vadd.f32 %v1065_v56, %v887_v52  ;;  %v1067_v59 = vpop.f32.mrb[3].mxu0 }
 0x269   : > { %v1068_v61 = vadd.f32 %v1067_v59, %v891_v54  ;;  %v895_v54 = vrot.slane %v3394_v50, %v894_v47 }
 0x26a   : > { %v1127_v62 = vpack.c.bf16 %v1066_v58, %v1062_v57 }
 0x26b   : > { %v1128_v63 = vpack.c.bf16 %v1068_v61, %v1064_v60  ;;  %v1104_v52 = vpop.f32.mrb[0].mxu1 }
 0x26c   : > { %v2835_v53 = vpop.f32.mrb[1].mxu1  ;;  %v1105_v57 = vadd.f32 %v1104_v52, %v895_v54 }
 0x26d   : > { %1263 = vrot.lane.b32.xlu0 %v1128_v63, %s3139_s29  ;;  %v1134_v0 = vsel %vm1129_vm1, %v1128_v63, 0  ;;  %v1107_v55 = vpop.f32.mrb[2].mxu1 }
 0x26e   : > { %2838 = vmatpush3.bf16.xpose.msra.mxu0 %v1134_v0  ;;  %v2836_v56 = vpop.f32.mrb[3].mxu1  ;;  %v1108_v58 = vadd.f32 %v1107_v55, %v895_v54 }
 0x26f   : > { %2849 = vmatprep.subr.bf16.mxu0 %v3137_v46 }
 0x270   : > { %v1213_v59 = vpack.c.bf16 %v1108_v58, %v1105_v57 }
 0x271   : > { %1260 = vrot.lane.b32.xlu0 %v1127_v62, %s3139_s29 }
 0x272   : > { %2844 = vmatpush3.bf16.msra.mxu1 %v1213_v59 }
 0x273   : > { %2855 = vmatprep.subr.bf16.mxu1 %v3137_v46 }
 0x275   : > { %2840 = vmatmul.mubr.msk.bf16.vlgmr.msra.gmra.mrb[4].mxu0 %vm1129_vm1, %v1127_v62 }
 0x276   : > { %2851 = vmatprep.mubr.msk.bf16.mxu0 %vm3138_vm0, %v3137_v46 }
 0x2df   : > { %v1264_v5 = vpop.permute.xlu0 %1263 }
 0x2e0   : > { %v1269_v6 = vsel %vm1129_vm1, %v1264_v5, 0 }
 0x2e1   : > { %2850 = vmatpush3.bf16.xpose.msra.mxu0 %v1269_v6 }
 0x2e2   : > { %2861 = vmatprep.subr.bf16.mxu0 %v3137_v46 }
 0x2e3   : > { %v1261_v9 = vpop.permute.xlu0 %1260 }
 0x2e8   : > { %2852 = vmatmul.mubr.msk.bf16.vlgmr.msra.gmra.mrb[8].mxu0 %vm1129_vm1, %v1261_v9 }
 0x2e9   : > { %2869 = vmatprep.mubr.msk.bf16.mxu0 %vm3138_vm0, %v3137_v46 }
 0x348   : > { %v1170_v12 = vpop.f32.mrb[4].mxu0 }
 0x349   : > { %v1177_v14 = vmul.f32 0.125, %v1170_v12  ;;  %v2841_v15 = vpop.f32.mrb[5].mxu0  ;;  %v2972_v12 = vld [vmem:[%s3288_s19 + $0x20] sm:$0xff]  }
 0x34a   : > { %v1173_v16 = vpop.f32.mrb[6].mxu0  ;;  %2862 = vmatpush3.bf16.msra.mxu0 %v2972_v12  ;;  %v2991_v12 = vld [vmem:[%s3312_s1 + $0x48] ss:$16 sps:$4 sm:$0xff]  }
 0x34b   : > { %v1178_v17 = vmul.f32 0.125, %v1173_v16  ;;  %v2842_v18 = vpop.f32.mrb[7].mxu0  ;;  %v1185_v19 = vadd.f32 %v2655_v13, %v1177_v14  ;;  %2863 = vmatprep.subr.bf16.mxu0 %v3137_v46  ;;  %v2974_v14 = vld [vmem:[%s3288_s19 + $0x30] sm:$0xff]  }
 0x34d   : > { %v1188_v20 = vsel %vm1187_vm2, %v1185_v19, -inf  ;;  %v1186_v21 = vadd.f32 %v2655_v13, %v1178_v17 }
 0x34e   : > { %1189 = vmax.xlane.f32.xlu1 %v1188_v20 }
 0x34f   : > { %v1191_v22 = vsel %vm1187_vm2, %v1186_v21, -inf }
 0x352   : > { %1192 = vmax.xlane.f32.xlu1 %v1191_v22  ;;  %v2968_v22 = vld [vmem:[%s3288_s19] sm:$0xff]  }
 0x3bb   : > { %v1305_v23 = vpop.f32.mrb[8].mxu0 }
 0x3bc   : > { %v1312_v24 = vmul.f32 0.125, %v1305_v23  ;;  %v2853_v25 = vpop.f32.mrb[9].mxu0 }
 0x3bd   : > { %v1308_v26 = vpop.f32.mrb[10].mxu0  ;;  %v2970_v25 = vld [vmem:[%s3288_s19 + $0x10] sm:$0xff]  }
 0x3be   : > { %v1313_v27 = vmul.f32 0.125, %v1308_v26  ;;  %v2854_v29 = vpop.f32.mrb[11].mxu0  ;;  %v1314_v30 = vadd.f32 %v2655_v13, %v1312_v24  ;;  %v2969_v24 = vld [vmem:[%s3288_s19 + $0x8] sm:$0xff]   ;;  %v2971_v26 = vld [vmem:[%s3288_s19 + $0x18] sm:$0xff]  }
 0x3c0   : > { %v1316_v31 = vsel %vm1187_vm2, %v1314_v30, -inf  ;;  %v1315_v32 = vadd.f32 %v2655_v13, %v1313_v27  ;;  %v2973_v13 = vld [vmem:[%s3288_s19 + $0x28] sm:$0xff]   ;;  %v2975_v27 = vld [vmem:[%s3288_s19 + $0x38] sm:$0xff]   ;;  %s3743_s19 = scalar_lea.vmem %s3684_s7, %s3267_s30 }
 0x3c1   : > { %1317 = vmax.xlane.f32.xlu0 %v1316_v31  ;;  %2864 = vmatpush3.bf16.msra.mxu0 %v2973_v13  ;;  %v2996_v13 = vld [vmem:[%s3312_s1 + $0x64] ss:$16 sps:$4 sm:$0xff]  }
 0x3c2   : > { %v1319_v33 = vsel %vm1187_vm2, %v1315_v32, -inf  ;;  %2865 = vmatprep.subr.bf16.mxu0 %v3137_v46 }
 0x3c3   : > { %1320 = vmax.xlane.f32.xlu1 %v1319_v33 }
 0x3c5   : > { %2866 = vmatpush3.bf16.msra.mxu0 %v2974_v14  ;;  %v2999_v14 = vld [vmem:[%s3312_s1 + $0x6c] ss:$16 sps:$4 sm:$0xff]  }
 0x3c6   : > { %2867 = vmatprep.subr.bf16.mxu0 %v3137_v46 }
 0x3c9   : > { %2868 = vmatpush3.bf16.msra.mxu0 %v2975_v27  ;;  %v3017_v27 = vld [vmem:[%s3312_s1 + $0xcc] ss:$16 sps:$4 sm:$0xff]  }
 0x3db   : > { %v1190_v34 = vpop.xlane.xlu1 %1189 }
 0x3dc   : > { %v1194_v35 = vsub.f32 %v1185_v19, %v1190_v34 }
 0x3de   : > { %v1196_v36 = vmul.f32 1.442695, %v1194_v35 }
 0x3df   : > { %v1193_v37 = vpop.xlane.xlu1 %1192 }
 0x3e0   : > { %3056 = vpow2.f32 %v1196_v36  ;;  %v1195_v38 = vsub.f32 %v1186_v21, %v1193_v37 }
 0x3e2   : > { %v1198_v39 = vmul.f32 1.442695, %v1195_v38 }
 0x3e4   : > { %3058 = vpow2.f32 %v1198_v39 }
 0x3ea   : > { %v3057_v40 = vpop.eup %3056 }
 0x3eb   : > { %v1200_v41 = vsel %vm1187_vm2, %v3057_v40, 0.0 }
 0x3ec   : > { %1201 = vadd.xlane.f32.xlu1 %v1200_v41 }
 0x3ee   : > { %v3059_v42 = vpop.eup %3058 }
 0x3ef   : > { %v1203_v45 = vsel %vm1187_vm2, %v3059_v42, 0.0 }
 0x3f0   : > { %1204 = vadd.xlane.f32.xlu1 %v1203_v45  ;;  %v2669_v45 = vld [vmem:[%s3743_s19] ss:$0 sm:$0xff] }
 0x44e   : > { %v1318_v60 = vpop.xlane.xlu0 %1317 }
 0x44f   : > { %v1322_v61 = vsub.f32 %v1314_v30, %v1318_v60  ;;  %v2976_v60 = vld [vmem:[%s3312_s1] ss:$16 sps:$4 sm:$0xff]  }
 0x450   : > { %v1321_v62 = vpop.xlane.xlu1 %1320 }
 0x451   : > { %v1324_v63 = vmul.f32 1.442695, %v1322_v61  ;;  %v1323_v0 = vsub.f32 %v1315_v32, %v1321_v62  ;;  %v2978_v61 = vld [vmem:[%s3312_s1 + $0x4] ss:$16 sps:$4 sm:$0xff]   ;;  %v2979_v62 = vld [vmem:[%s3312_s1 + $0x8] ss:$16 sps:$4 sm:$0xff]  }
 0x452   : > { %1802 = vmatprep.subr.bf16.mxu0 %v2978_v61  ;;  %v3026_v61 = vld [vmem:[%s3744_s27] sm:$0xff]  }
 0x453   : > { %3060 = vpow2.f32 %v1324_v63  ;;  %v1326_v1 = vmul.f32 1.442695, %v1323_v0  ;;  %v2981_v63 = vld [vmem:[%s3312_s1 + $0xc] ss:$16 sps:$4 sm:$0xff]   ;;  %v2984_v0 = vld [vmem:[%s3312_s1 + $0x24] ss:$16 sps:$4 sm:$0xff]  }
 0x455   : > { %3062 = vpow2.f32 %v1326_v1  ;;  %v2987_v1 = vld [vmem:[%s3312_s1 + $0x2c] ss:$16 sps:$4 sm:$0xff]  }
 0x45d   : > { %v3061_v2 = vpop.eup %3060 }
 0x45e   : > { %v1328_v50 = vsel %vm1187_vm2, %v3061_v2, 0.0 }
 0x45f   : > { %v3063_v3 = vpop.eup %3062  ;;  %1329 = vadd.xlane.f32.xlu1 %v1328_v50 }
 0x460   : > { %v1331_v4 = vsel %vm1187_vm2, %v3063_v3, 0.0 }
 0x463   : > { %1332 = vadd.xlane.f32.xlu1 %v1331_v4 }
 0x474   : > { %1351 = vrot.lane.b32.xlu1 %v1213_v59, %s3139_s29 }
 0x479   : > { %v1202_v5 = vpop.xlane.xlu1 %1201 }
 0x47a   : > { %3064 = vrcp.f32 %v1202_v5 }
 0x47d   : > { %v1205_v6 = vpop.xlane.xlu1 %1204 }
 0x47e   : > { %3066 = vrcp.f32 %v1205_v6 }
 0x484   : > { %v3065_v7 = vpop.eup %3064 }
 0x485   : > { %v1208_v8 = vmul.f32 %v3065_v7, %v3057_v40 }
 0x487   : > { %1210 = vst.msk [vmem:[%s3345_s3] sm:$0xff] %vm1187_vm2, %v1208_v8 }
 0x488   : > { %v3067_v9 = vpop.eup %3066 }
 0x489   : > { %v1209_v10 = vmul.f32 %v3067_v9, %v3059_v42  ;;  %v2990_v9 = vld [vmem:[%s3312_s1 + $0x44] ss:$16 sps:$4 sm:$0xff]  }
 0x48b   : > { %1211 = vst.msk [vmem:[%s3345_s3 + $0x8] sm:$0xff] %vm1187_vm2, %v1209_v10  ;;  %v1212_v11 = vpack.c.bf16 %v1209_v10, %v1208_v8  ;;  %v2993_v10 = vld [vmem:[%s3312_s1 + $0x4c] ss:$16 sps:$4 sm:$0xff]  }
 0x48d   : > { %2846 = vmatmul.mubr.msk.bf16.vlgmr.msra.gmra.mrb[4].mxu1 %vm1187_vm2, %v1212_v11  ;;  %v2988_v11 = vld [vmem:[%s3312_s1 + $0x40] ss:$16 sps:$4 sm:$0xff]  }
 0x48e   : > { %2857 = vmatprep.mubr.msk.bf16.mxu1 %vm3138_vm0, %v3137_v46 }
 0x4ec   : > { %v1330_v15 = vpop.xlane.xlu1 %1329 }
 0x4ed   : > { %3068 = vrcp.f32 %v1330_v15  ;;  %v2994_v15 = vld [vmem:[%s3312_s1 + $0x60] ss:$16 sps:$4 sm:$0xff]  }
 0x4f0   : > { %v1333_v16 = vpop.xlane.xlu1 %1332 }
 0x4f1   : > { %3070 = vrcp.f32 %v1333_v16  ;;  %v2997_v16 = vld [vmem:[%s3312_s1 + $0x68] ss:$16 sps:$4 sm:$0xff]  }
 0x4f4   : > { %v1352_v17 = vpop.permute.xlu1 %1351 }
 0x4f5   : > { %2856 = vmatpush3.bf16.msra.mxu1 %v1352_v17  ;;  %v3002_v17 = vld [vmem:[%s3312_s1 + $0x84] ss:$16 sps:$4 sm:$0xff]  }
 0x4f6   : > { %2873 = vmatprep.subr.bf16.mxu1 %v3137_v46 }
 0x4f7   : > { %v3069_v18 = vpop.eup %3068 }
 0x4f8   : > { %v3467_v20 = vmul.f32 %v3069_v18, %v3061_v2  ;;  %v2982_v2 = vld [vmem:[%s3312_s1 + $0x20] ss:$16 sps:$4 sm:$0xff]   ;;  %v3005_v18 = vld [vmem:[%s3312_s1 + $0x8c] ss:$16 sps:$4 sm:$0xff]  }
 0x4fb   : > { %v3071_v19 = vpop.eup %3070 }
 0x4fc   : > { %v3469_v21 = vmul.f32 %v3071_v19, %v3063_v3  ;;  %v3000_v19 = vld [vmem:[%s3312_s1 + $0x80] ss:$16 sps:$4 sm:$0xff]  }
 0x4fe   : > { %v1349_v23 = vpack.c.bf16 %v3469_v21, %v3467_v20 }
 0x500   : > { %2858 = vmatmul.mubr.msk.bf16.vlgmr.msra.gmra.mrb[8].mxu1 %vm1187_vm2, %v1349_v23  ;;  %v3011_v23 = vld [vmem:[%s3312_s1 + $0xac] ss:$16 sps:$4 sm:$0xff]  }
 0x501   : > { %2874 = vmatpush3.bf16.msra.mxu1 %v2968_v22  ;;  %2881 = vmatprep.mubr.msk.bf16.mxu1 %vm3138_vm0, %v3137_v46  ;;  %v3008_v22 = vld [vmem:[%s3312_s1 + $0xa4] ss:$16 sps:$4 sm:$0xff]  }
 0x502   : > { %2875 = vmatprep.subr.bf16.mxu1 %v3137_v46 }
 0x505   : > { %2876 = vmatpush3.bf16.msra.mxu1 %v2969_v24  ;;  %v3006_v24 = vld [vmem:[%s3312_s1 + $0xa0] ss:$16 sps:$4 sm:$0xff]  }
 0x506   : > { %2877 = vmatprep.subr.bf16.mxu1 %v3137_v46 }
 0x509   : > { %2878 = vmatpush3.bf16.msra.mxu1 %v2970_v25  ;;  %v3009_v25 = vld [vmem:[%s3312_s1 + $0xa8] ss:$16 sps:$4 sm:$0xff]  }
 0x50a   : > { %2879 = vmatprep.subr.bf16.mxu1 %v3137_v46 }
 0x50d   : > { %2880 = vmatpush3.bf16.msra.mxu1 %v2971_v26  ;;  %v3014_v26 = vld [vmem:[%s3312_s1 + $0xc4] ss:$16 sps:$4 sm:$0xff]  }
 0x50e   : > { %1845 = vmatprep.subr.bf16.mxu1 %v2981_v63  ;;  %v3028_v63 = vld [vmem:[%s3744_s27 + $0x48] sm:$0xff]  }
 0x560   : > { %v1251_v29 = vpop.f32.mrb[4].mxu1 }
 0x561   : > { %v2847_v30 = vpop.f32.mrb[5].mxu1 }
 0x562   : > { %v1254_v31 = vpop.f32.mrb[6].mxu1  ;;  %v3015_v30 = vld [vmem:[%s3312_s1 + $0xc8] ss:$16 sps:$4 sm:$0xff]  }
 0x563   : > { %v1258_v32 = vpack.c.bf16 %v1254_v31, %v1251_v29  ;;  %v2848_v33 = vpop.f32.mrb[7].mxu1  ;;  %v3012_v29 = vld [vmem:[%s3312_s1 + $0xc0] ss:$16 sps:$4 sm:$0xff]   ;;  %v3020_v31 = vld [vmem:[%s3312_s1 + $0xe4] ss:$16 sps:$4 sm:$0xff]  }
 0x564   : > { %v3023_v33 = vld [vmem:[%s3312_s1 + $0xec] ss:$16 sps:$4 sm:$0xff]  }
 0x565   : > { %2882 = vmatmul.mubr.msk.bf16.vlgmr.msra.gmra.mrb[12].mxu1 %vm1129_vm1, %v1258_v32  ;;  %v3018_v32 = vld [vmem:[%s3312_s1 + $0xe0] ss:$16 sps:$4 sm:$0xff]  }
 0x566   : > { %1877 = vmatprep.mubr.bf16.mxu1 %v3136_v28  ;;  %1846 = vmatpush1.bf16.msra.mxu1 %v2979_v62  ;;  %v3027_v62 = vld [vmem:[%s3744_s27 + $0x80] sm:$0xff]  }
 0x567   : > { %1847 = vmatprep.subr.bf16.mxu1 %v2987_v1  ;;  %v3030_v1 = vld [vmem:[%s3744_s27 + $0x8] sm:$0xff]  }
 0x5d3   : > { %v1391_v34 = vpop.f32.mrb[8].mxu1 }
 0x5d4   : > { %v2859_v35 = vpop.f32.mrb[9].mxu1 }
 0x5d5   : > { %v1394_v36 = vpop.f32.mrb[10].mxu1 }
 0x5d6   : > { %v1398_v37 = vpack.c.bf16 %v1394_v36, %v1391_v34  ;;  %v2860_v38 = vpop.f32.mrb[11].mxu1  ;;  %v3021_v34 = vld [vmem:[%s3312_s1 + $0xe8] ss:$16 sps:$4 sm:$0xff]  }
 0x5d8   : > { %2870 = vmatmul.mubr.msk.bf16.vlgmr.msra.gmra.mrb[12].mxu0 %vm1129_vm1, %v1398_v37 }
 0x5d9   : > { %1834 = vmatprep.mubr.bf16.mxu0 %v3136_v28  ;;  %1803 = vmatpush1.bf16.msra.mxu0 %v2976_v60  ;;  %v3025_v60 = vld [vmem:[%s3744_s27 + $0xc0] sm:$0xff]  }
 0x5da   : > { %1804 = vmatprep.subr.bf16.mxu0 %v2984_v0  ;;  %v3029_v0 = vld [vmem:[%s3744_s27 + $0xc8] sm:$0xff]  }
 0x5dd   : > { %1805 = vmatpush1.bf16.msra.mxu0 %v2982_v2  ;;  %v3031_v2 = vld [vmem:[%s3744_s27 + $0x88] sm:$0xff]  }
 0x5de   : > { %1806 = vmatprep.subr.bf16.mxu0 %v2990_v9  ;;  %v3041_v9 = vld [vmem:[%s3744_s27 + $0xe0] sm:$0xff]  }
 0x5e1   : > { %1807 = vmatpush1.bf16.msra.mxu0 %v2988_v11  ;;  %v3043_v11 = vld [vmem:[%s3744_s27 + $0xa0] sm:$0xff]  }
 0x5e2   : > { %1808 = vmatprep.subr.bf16.mxu0 %v2996_v13  ;;  %v3045_v13 = vld [vmem:[%s3744_s27 + $0xe8] sm:$0xff]  }
 0x5e5   : > { %1809 = vmatpush1.bf16.msra.mxu0 %v2994_v15  ;;  %v3047_v15 = vld [vmem:[%s3744_s27 + $0xa8] sm:$0xff]  }
 0x5e6   : > { %1810 = vmatprep.subr.bf16.mxu0 %v3002_v17  ;;  %v3049_v17 = vld [vmem:[%s3744_s27 + $0xf0] sm:$0xff]  }
 0x5e9   : > { %1811 = vmatpush1.bf16.msra.mxu0 %v3000_v19  ;;  %v3051_v19 = vld [vmem:[%s3744_s27 + $0xb0] sm:$0xff]  }
 0x5ea   : > { %1812 = vmatprep.subr.bf16.mxu0 %v3008_v22  ;;  %v3053_v22 = vld [vmem:[%s3744_s27 + $0xf8] sm:$0xff]  }
 0x5ed   : > { %1813 = vmatpush1.bf16.msra.mxu0 %v3006_v24  ;;  %v3055_v24 = vld [vmem:[%s3744_s27 + $0xb8] sm:$0xff]  }
 0x5ee   : > { %1814 = vmatprep.subr.bf16.mxu0 %v3014_v26  ;;  %v1636_v26 = vsub.s32 3, %v3390_v48 }
 0x5f1   : > { %1815 = vmatpush1.bf16.msra.mxu0 %v3012_v29 }
 0x5f2   : > { %1816 = vmatprep.subr.bf16.mxu0 %v3020_v31 }
 0x5f5   : > { %1817 = vmatpush1.bf16.msra.mxu0 %v3018_v32 }
 0x638   : > { %v1528_v46 = vpop.f32.mrb[12].mxu1 }
 0x639   : > { %v2883_v39 = vpop.f32.mrb[13].mxu1 }
 0x63a   : > { %v1531_v40 = vpop.f32.mrb[14].mxu1 }
 0x63b   : > { %v2884_v41 = vpop.f32.mrb[15].mxu1 }
 0x6ab   : > { %v1460_v42 = vpop.f32.mrb[12].mxu0 }
 0x6ac   : > { %v1529_v52 = vadd.f32 %v1528_v46, %v1460_v42  ;;  %v2871_v53 = vpop.f32.mrb[13].mxu0 }
 0x6ad   : > { %v1463_v54 = vpop.f32.mrb[14].mxu0 }
 0x6ae   : > { %v1542_v28 = vadd.f32 %v2669_v45, %v1529_v52  ;;  %v1532_v55 = vadd.f32 %v1531_v40, %v1463_v54  ;;  %v2872_v56 = vpop.f32.mrb[15].mxu0 }
 0x6b0   : > { %v1543_v57 = vadd.f32 %v2669_v45, %v1532_v55  ;;  %v1544_v58 = vadd.f32 %v1542_v28, %v3374_v43  ;;  %v2985_v43 = vld [vmem:[%s3312_s1 + $0x28] ss:$16 sps:$4 sm:$0xff]   ;;  %v2670_v45 = vld [vmem:[%s3746_s20] ss:$0 sm:$0xff] }
 0x6b1   : > { %1848 = vmatpush1.bf16.msra.mxu1 %v2985_v43  ;;  %v2671_v28 = vld [vmem:[%s3748_s15] ss:$0 sm:$0xff]  ;;  %v3032_v43 = vld [vmem:[%s3744_s27 + $0x50] sm:$0xff]  }
 0x6b2   : > { %1548 = vadd.xlane.f32.xlu0 %v1544_v58  ;;  %v1545_v59 = vadd.f32 %v1543_v57, %v3377_v44  ;;  %1849 = vmatprep.subr.bf16.mxu1 %v2993_v10  ;;  %v3042_v10 = vld [vmem:[%s3744_s27 + $0x20] sm:$0xff]  }
 0x6b5   : > { %1850 = vmatpush1.bf16.msra.mxu1 %v2991_v12  ;;  %v3044_v12 = vld [vmem:[%s3744_s27 + $0x68] sm:$0xff]  }
 0x6b6   : > { %1550 = vadd.xlane.f32.xlu0 %v1545_v59  ;;  %1851 = vmatprep.subr.bf16.mxu1 %v2999_v14  ;;  %v3046_v14 = vld [vmem:[%s3744_s27 + $0x28] sm:$0xff]  }
 0x6b9   : > { %1852 = vmatpush1.bf16.msra.mxu1 %v2997_v16  ;;  %v3048_v16 = vld [vmem:[%s3744_s27 + $0x70] sm:$0xff]  }
 0x6ba   : > { %1853 = vmatprep.subr.bf16.mxu1 %v3005_v18  ;;  %v3050_v18 = vld [vmem:[%s3744_s27 + $0x30] sm:$0xff]  }
 0x73f   : > { %v1549_v44 = vpop.xlane.xlu0 %1548 }
 0x740   : > { %v1553_v50 = vmul.f32 0.0078125, %v1549_v44  ;;  %v3033_v44 = vld [vmem:[%s3744_s27 + $0xd0] sm:$0xff]  }
 0x742   : > { %v3503_v3 = vsub.f32 %v1544_v58, %v1553_v50  ;;  %v3034_v50 = vld [vmem:[%s3744_s27 + $0x10] sm:$0xff]  }
 0x743   : > { %v1551_v4 = vpop.xlane.xlu0 %1550 }
 0x744   : > { %v1554_v5 = vmul.f32 0.0078125, %v1551_v4  ;;  %v1557_v6 = vmul.f32 %v3503_v3, %v3503_v3  ;;  %v3036_v4 = vld [vmem:[%s3744_s27 + $0x58] sm:$0xff]  }
 0x746   : > { %v3507_v7 = vsub.f32 %v1545_v59, %v1554_v5  ;;  %1559 = vadd.xlane.f32.xlu1 %v1557_v6  ;;  %v3024_v59 = vld [vmem:[%s3744_s27 + $0x40] sm:$0xff]   ;;  %v3037_v5 = vld [vmem:[%s3744_s27 + $0xd8] sm:$0xff]  }
 0x747   : > { %2773 = vmatprep.subr.bf16.mxu0 %v3024_v59  ;;  %v3038_v6 = vld [vmem:[%s3744_s27 + $0x18] sm:$0xff]  }
 0x748   : > { %v1558_v8 = vmul.f32 %v3507_v7, %v3507_v7 }
 0x74a   : > { %1561 = vadd.xlane.f32.xlu0 %v1558_v8  ;;  %v3040_v8 = vld [vmem:[%s3744_s27 + $0x60] sm:$0xff]  }
 0x757   : > { %1342 = vrot.lane.b32.xlu1 %v3469_v21, %s3140_s14  ;;  %v3003_v21 = vld [vmem:[%s3312_s1 + $0x88] ss:$16 sps:$4 sm:$0xff]  }
 0x758   : > { %1854 = vmatpush1.bf16.msra.mxu1 %v3003_v21  ;;  %v3052_v21 = vld [vmem:[%s3744_s27 + $0x78] sm:$0xff]  }
 0x759   : > { %1855 = vmatprep.subr.bf16.mxu1 %v3011_v23  ;;  %v3054_v23 = vld [vmem:[%s3744_s27 + $0x38] sm:$0xff]  }
 0x75c   : > { %1856 = vmatpush1.bf16.msra.mxu1 %v3009_v25  ;;  %v1620_v25 = vld [vmem:[%s3749_s4] sm:$0xf] }
 0x75d   : > { %1857 = vmatprep.subr.bf16.mxu1 %v3017_v27  ;;  %v1625_v27 = vrot.slane %v1620_v25, %v886_v49  ;;  %v1633_v29 = vrot.slane %v1620_v25, %v894_v47  ;;  %v1637_v31 = vrot.slane %v1620_v25, %v1636_v26 }
 0x760   : > { %1858 = vmatpush1.bf16.msra.mxu1 %v3015_v30  ;;  %v1629_v30 = vrot.slane %v1620_v25, %v890_v51 }
 0x761   : > { %1859 = vmatprep.subr.bf16.mxu1 %v3023_v33 }
 0x764   : > { %1860 = vmatpush1.bf16.msra.mxu1 %v3021_v34 }
 0x765   : > { %2795 = vmatprep.subr.bf16.mxu1 %v3025_v60 }
 0x7d3   : > { %v1560_v35 = vpop.xlane.xlu1 %1559 }
 0x7d4   : > { %v1563_v36 = vmul.f32 0.0078125, %v1560_v35 }
 0x7d6   : > { %v1565_v37 = vadd.f32 1e-12, %v1563_v36 }
 0x7d7   : > { %v1343_v38 = vpop.permute.xlu1 %1342  ;;  %v1562_v46 = vpop.xlane.xlu0 %1561 }
 0x7d8   : > { %3072 = vrsqrt.f32 %v1565_v37  ;;  %1348 = vst.msk [vmem:[%s3345_s3 + $0x8] sm:$0xff] %vm1346_vm3, %v1343_v38  ;;  %v1564_v39 = vmul.f32 0.0078125, %v1562_v46 }
 0x7da   : > { %v1566_v40 = vadd.f32 1e-12, %v1564_v39 }
 0x7dc   : > { %3074 = vrsqrt.f32 %v1566_v40 }
 0x7e2   : > { %v3073_v41 = vpop.eup %3072 }
 0x7e3   : > { %v1569_v42 = vmul.f32 %v3073_v41, %v3503_v3  ;;  %v3035_v3 = vld [vmem:[%s3744_s27 + $0x90] sm:$0xff]  }
 0x7e5   : > { %v1577_v54 = vmul.f32 %v2670_v45, %v1569_v42 }
 0x7e6   : > { %v3075_v52 = vpop.eup %3074 }
 0x7e7   : > { %v1570_v53 = vmul.f32 %v3075_v52, %v3507_v7  ;;  %v3551_v56 = vadd.f32 %v2671_v28, %v1577_v54  ;;  %v3039_v7 = vld [vmem:[%s3744_s27 + $0x98] sm:$0xff]  }
 0x7e9   : > { %v1578_v55 = vmul.f32 %v2670_v45, %v1570_v53 }
 0x7eb   : > { %v3553_v57 = vadd.f32 %v2671_v28, %v1578_v55 }
 0x7ed   : > { %v1619_v58 = vpack.c.bf16 %v3553_v57, %v3551_v56 }
 0x7ef   : > { %1835 = vmatmul.mubr.bf16.vlgmr.msra.gmra.mrb[16].mxu0 %v1619_v58  ;;  %1878 = vmatmul.mubr.bf16.vlgmr.msra.gmra.mrb[16].mxu1 %v1619_v58 }
 0x7f0   : > { %2774 = vmatpush3.bf16.msra.mxu0 %v3026_v61  ;;  %2796 = vmatpush3.bf16.msra.mxu1 %v3027_v62 }
 0x7f1   : > { %2775 = vmatprep.subr.bf16.mxu0 %v3028_v63  ;;  %2797 = vmatprep.subr.bf16.mxu1 %v3029_v0 }
 0x7f4   : > { %2776 = vmatpush3.bf16.msra.mxu0 %v3030_v1  ;;  %2798 = vmatpush3.bf16.msra.mxu1 %v3031_v2 }
 0x7f5   : > { %2777 = vmatprep.subr.bf16.mxu0 %v3032_v43  ;;  %2799 = vmatprep.subr.bf16.mxu1 %v3033_v44 }
 0x7f8   : > { %2778 = vmatpush3.bf16.msra.mxu0 %v3034_v50  ;;  %2800 = vmatpush3.bf16.msra.mxu1 %v3035_v3 }
 0x7f9   : > { %2779 = vmatprep.subr.bf16.mxu0 %v3036_v4  ;;  %2801 = vmatprep.subr.bf16.mxu1 %v3037_v5 }
 0x7fc   : > { %2780 = vmatpush3.bf16.msra.mxu0 %v3038_v6  ;;  %2802 = vmatpush3.bf16.msra.mxu1 %v3039_v7 }
 0x7fd   : > { %2781 = vmatprep.subr.bf16.mxu0 %v3040_v8  ;;  %2803 = vmatprep.subr.bf16.mxu1 %v3041_v9 }
 0x800   : > { %2782 = vmatpush3.bf16.msra.mxu0 %v3042_v10  ;;  %2804 = vmatpush3.bf16.msra.mxu1 %v3043_v11 }
 0x801   : > { %2783 = vmatprep.subr.bf16.mxu0 %v3044_v12  ;;  %2805 = vmatprep.subr.bf16.mxu1 %v3045_v13 }
 0x804   : > { %2784 = vmatpush3.bf16.msra.mxu0 %v3046_v14  ;;  %2806 = vmatpush3.bf16.msra.mxu1 %v3047_v15 }
 0x805   : > { %2785 = vmatprep.subr.bf16.mxu0 %v3048_v16  ;;  %2807 = vmatprep.subr.bf16.mxu1 %v3049_v17 }
 0x808   : > { %2786 = vmatpush3.bf16.msra.mxu0 %v3050_v18  ;;  %2808 = vmatpush3.bf16.msra.mxu1 %v3051_v19 }
 0x809   : > { %2787 = vmatprep.subr.bf16.mxu0 %v3052_v21  ;;  %2809 = vmatprep.subr.bf16.mxu1 %v3053_v22 }
 0x80c   : > { %2788 = vmatpush3.bf16.msra.mxu0 %v3054_v23  ;;  %2810 = vmatpush3.bf16.msra.mxu1 %v3055_v24 }
 0x8c2   : > { %v1836_v32 = vpop.f32.mrb[16].mxu0  ;;  %v1879_v33 = vpop.f32.mrb[16].mxu1 }
 0x8c3   : > { %v3597_v34 = vadd.f32 %v1836_v32, %v1625_v27  ;;  %v3599_v35 = vadd.f32 %v1879_v33, %v1633_v29  ;;  %v1838_v36 = vpop.f32.mrb[17].mxu0  ;;  %v1881_v37 = vpop.f32.mrb[17].mxu1 }
 0x8c4   : > { %v3601_v38 = vadd.f32 %v1838_v36, %v1629_v30  ;;  %v3603_v46 = vadd.f32 %v1881_v37, %v1637_v31  ;;  %v1840_v49 = vpop.f32.mrb[18].mxu0  ;;  %v1883_v39 = vpop.f32.mrb[18].mxu1 }
 0x8c5   : > { %v1896_v47 = vmul.f32 0.044715, %v3597_v34  ;;  %v1898_v48 = vmul.f32 0.044715, %v3599_v35  ;;  %v1841_v51 = vadd.f32 %v1840_v49, %v1625_v27  ;;  %v1884_v40 = vadd.f32 %v1883_v39, %v1633_v29  ;;  %v1842_v41 = vpop.f32.mrb[19].mxu0  ;;  %v1885_v42 = vpop.f32.mrb[19].mxu1 }
 0x8c6   : > { %v1897_v45 = vmul.f32 0.044715, %v3601_v38  ;;  %v1899_v52 = vmul.f32 0.044715, %v3603_v46  ;;  %v3609_v53 = vadd.f32 %v1842_v41, %v1629_v30  ;;  %v3611_v54 = vadd.f32 %v1885_v42, %v1637_v31 }
 0x8c7   : > { %v1904_v28 = vmul.f32 %v1896_v47, %v3597_v34  ;;  %v1906_v55 = vmul.f32 %v1898_v48, %v3599_v35  ;;  %v1900_v58 = vmul.f32 0.044715, %v1841_v51  ;;  %v1902_v59 = vmul.f32 0.044715, %v1884_v40 }
 0x8c8   : > { %v1905_v60 = vmul.f32 %v1897_v45, %v3601_v38  ;;  %v1907_v61 = vmul.f32 %v1899_v52, %v3603_v46  ;;  %v1901_v62 = vmul.f32 0.044715, %v3609_v53  ;;  %v1903_v63 = vmul.f32 0.044715, %v3611_v54 }
 0x8c9   : > { %v1912_v0 = vmul.f32 %v1904_v28, %v3597_v34  ;;  %v1914_v1 = vmul.f32 %v1906_v55, %v3599_v35  ;;  %v1908_v2 = vmul.f32 %v1900_v58, %v1841_v51  ;;  %v1910_v43 = vmul.f32 %v1902_v59, %v1884_v40 }
 0x8ca   : > { %v1913_v44 = vmul.f32 %v1905_v60, %v3601_v38  ;;  %v1915_v50 = vmul.f32 %v1907_v61, %v3603_v46  ;;  %v1909_v3 = vmul.f32 %v1901_v62, %v3609_v53  ;;  %v1911_v4 = vmul.f32 %v1903_v63, %v3611_v54 }
 0x8cb   : > { %v1920_v5 = vadd.f32 %v1912_v0, %v3597_v34  ;;  %v1922_v6 = vadd.f32 %v1914_v1, %v3599_v35  ;;  %v1916_v7 = vmul.f32 %v1908_v2, %v1841_v51  ;;  %v1918_v8 = vmul.f32 %v1910_v43, %v1884_v40 }
 0x8cc   : > { %v1917_v9 = vmul.f32 %v1909_v3, %v3609_v53  ;;  %v1919_v10 = vmul.f32 %v1911_v4, %v3611_v54  ;;  %v1921_v15 = vadd.f32 %v1913_v44, %v3601_v38  ;;  %v1923_v19 = vadd.f32 %v1915_v50, %v3603_v46 }
 0x8cd   : > { %v1928_v11 = vmul.f32 0.7978846, %v1920_v5  ;;  %v1930_v12 = vmul.f32 0.7978846, %v1922_v6  ;;  %v1924_v13 = vadd.f32 %v1916_v7, %v1841_v51  ;;  %v1926_v14 = vadd.f32 %v1918_v8, %v1884_v40 }
 0x8ce   : > { %v1925_v16 = vadd.f32 %v1917_v9, %v3609_v53  ;;  %v1929_v21 = vmul.f32 0.7978846, %v1921_v15  ;;  %v1927_v23 = vadd.f32 %v1919_v10, %v3611_v54  ;;  %v1931_v24 = vmul.f32 0.7978846, %v1923_v19 }
 0x8cf   : > { %3076 = vtanh.f32 %v1928_v11  ;;  %v1932_v17 = vmul.f32 0.7978846, %v1924_v13  ;;  %v1934_v18 = vmul.f32 0.7978846, %v1926_v14  ;;  %v1888_v33 = vmul.f32 0.5, %v3597_v34 }
 0x8d0   : > { %3078 = vtanh.f32 %v1930_v12  ;;  %v1933_v22 = vmul.f32 0.7978846, %v1925_v16  ;;  %v1935_v25 = vmul.f32 0.7978846, %v1927_v23  ;;  %v1892_v36 = vmul.f32 0.5, %v1841_v51 }
 0x8d1   : > { %3080 = vtanh.f32 %v1932_v17  ;;  %v1890_v39 = vmul.f32 0.5, %v3599_v35  ;;  %v1894_v47 = vmul.f32 0.5, %v1884_v40  ;;  %v1889_v42 = vmul.f32 0.5, %v3601_v38 }
 0x8d2   : > { %3082 = vtanh.f32 %v1934_v18  ;;  %v1893_v58 = vmul.f32 0.5, %v3609_v53  ;;  %v1891_v51 = vmul.f32 0.5, %v3603_v46  ;;  %v1895_v62 = vmul.f32 0.5, %v3611_v54  ;;  %v2704_v46 = vld [vmem:[%s3750_s10] ss:$0 sm:$0xff] }
 0x8d3   : > { %3084 = vtanh.f32 %v1929_v21 }
 0x8d4   : > { %3086 = vtanh.f32 %v1933_v22 }
 0x8d5   : > { %3088 = vtanh.f32 %v1931_v24 }
 0x8d6   : > { %3090 = vtanh.f32 %v1935_v25 }
 0x8d9   : > { %v3077_v26 = vpop.eup %3076 }
 0x8da   : > { %v3079_v27 = vpop.eup %3078  ;;  %v1944_v29 = vadd.f32 1.0, %v3077_v26 }
 0x8db   : > { %v3081_v30 = vpop.eup %3080  ;;  %v1946_v31 = vadd.f32 1.0, %v3079_v27 }
 0x8dc   : > { %v3083_v32 = vpop.eup %3082  ;;  %v1948_v37 = vadd.f32 1.0, %v3081_v30  ;;  %v1952_v52 = vmul.f32 %v1944_v29, %v1888_v33 }
 0x8dd   : > { %v3085_v49 = vpop.eup %3084  ;;  %v1950_v48 = vadd.f32 1.0, %v3083_v32  ;;  %v1954_v60 = vmul.f32 %v1946_v31, %v1890_v39 }
 0x8de   : > { %v3087_v41 = vpop.eup %3086  ;;  %v1945_v45 = vadd.f32 1.0, %v3085_v49  ;;  %v1956_v28 = vmul.f32 %v1948_v37, %v1892_v36  ;;  %v2737_v37 = vld [vmem:[%s778_s6] ss:$0 sm:$0xff] }
 0x8df   : > { %v3089_v55 = vpop.eup %3088  ;;  %v1949_v59 = vadd.f32 1.0, %v3087_v41  ;;  %v1958_v61 = vmul.f32 %v1950_v48, %v1894_v47  ;;  %v2738_v49 = vld [vmem:[%s781_s8] ss:$0 sm:$0xff] }
 0x8e0   : > { %v3091_v34 = vpop.eup %3090  ;;  %v1947_v35 = vadd.f32 1.0, %v3089_v55  ;;  %v2024_v40 = vpack.c.bf16 %v1956_v28, %v1952_v52  ;;  %v1953_v63 = vmul.f32 %v1945_v45, %v1889_v42 }
 0x8e1   : > { %v1957_v0 = vmul.f32 %v1949_v59, %v1893_v58  ;;  %v1951_v38 = vadd.f32 1.0, %v3091_v34  ;;  %v2026_v1 = vpack.c.bf16 %v1958_v61, %v1954_v60 }
 0x8e2   : > { %v1955_v43 = vmul.f32 %v1947_v35, %v1891_v51 }
 0x8e3   : > { %v2025_v2 = vpack.c.bf16 %v1957_v0, %v1953_v63  ;;  %v1959_v44 = vmul.f32 %v1951_v38, %v1895_v62 }
 0x8e5   : > { %2259 = vmatprep.mubr.bf16.mxu0 %v2025_v2  ;;  %v2027_v53 = vpack.c.bf16 %v1959_v44, %v1955_v43 }
 0x8e6   : > { %2260 = vmatmul.mubr.bf16.vlgmr.msra.gmra.mrb[20].mxu0 %v2024_v40 }
 0x8e7   : > { %2300 = vmatprep.mubr.bf16.mxu1 %v2027_v53 }
 0x8e8   : > { %2301 = vmatmul.mubr.bf16.vlgmr.msra.gmra.mrb[20].mxu1 %v2026_v1 }
 0x9b9   : > { %v2789_v50 = vpop.f32.mrb[20].mxu0 }
 0x9ba   : > { %v2790_v54 = vpop.f32.mrb[21].mxu0 }
 0x9bb   : > { %v2811_v3 = vpop.f32.mrb[20].mxu1  ;;  %v2791_v4 = vadd.f32 %v2790_v54, %v2789_v50  ;;  %v2792_v5 = vpop.f32.mrb[22].mxu0 }
 0x9bc   : > { %v2812_v6 = vpop.f32.mrb[21].mxu1  ;;  %v2793_v7 = vpop.f32.mrb[23].mxu0 }
 0x9bd   : > { %v2262_v8 = vadd.f32 %v2791_v4, %v2704_v46  ;;  %v2813_v9 = vadd.f32 %v2812_v6, %v2811_v3  ;;  %v2814_v10 = vpop.f32.mrb[22].mxu1  ;;  %v2794_v11 = vadd.f32 %v2793_v7, %v2792_v5 }
 0x9be   : > { %v2815_v12 = vpop.f32.mrb[23].mxu1 }
 0x9bf   : > { %v2303_v13 = vadd.f32 %v2813_v9, %v2262_v8  ;;  %v2265_v14 = vadd.f32 %v2794_v11, %v2704_v46  ;;  %v2816_v15 = vadd.f32 %v2815_v12, %v2814_v10 }
 0x9c1   : > { %v2306_v16 = vadd.f32 %v2816_v15, %v2265_v14  ;;  %v2309_v17 = vadd.f32 %v2303_v13, %v3551_v56 }
 0x9c3   : > { %2313 = vadd.xlane.f32.xlu0 %v2309_v17  ;;  %v2310_v18 = vadd.f32 %v2306_v16, %v3553_v57 }
 0x9c7   : > { %2315 = vadd.xlane.f32.xlu0 %v2310_v18 }
 0xa50   : > { %v2314_v19 = vpop.xlane.xlu0 %2313 }
 0xa51   : > { %v2317_v21 = vmul.f32 0.0078125, %v2314_v19 }
 0xa53   : > { %v2319_v22 = vsub.f32 %v2309_v17, %v2317_v21 }
 0xa54   : > { %v2316_v23 = vpop.xlane.xlu0 %2315 }
 0xa55   : > { %v2318_v24 = vmul.f32 0.0078125, %v2316_v23  ;;  %v2321_v25 = vmul.f32 %v2319_v22, %v2319_v22 }
 0xa57   : > { %v2320_v26 = vsub.f32 %v2310_v18, %v2318_v24  ;;  %2323 = vadd.xlane.f32.xlu0 %v2321_v25 }
 0xa59   : > { %v2322_v27 = vmul.f32 %v2320_v26, %v2320_v26 }
 0xa5b   : > { %2325 = vadd.xlane.f32.xlu0 %v2322_v27 }
 0xa71   : > { %1340 = vrot.lane.b32.xlu0 %v3467_v20, %s3140_s14 }
 0xae4   : > { %v2324_v56 = vpop.xlane.xlu0 %2323 }
 0xae5   : > { %v2327_v29 = vmul.f32 0.0078125, %v2324_v56 }
 0xae7   : > { %v2329_v57 = vadd.f32 1e-12, %v2327_v29 }
 0xae8   : > { %v2326_v30 = vpop.xlane.xlu0 %2325 }
 0xae9   : > { %3092 = vrsqrt.f32 %v2329_v57  ;;  %v2328_v31 = vmul.f32 0.0078125, %v2326_v30 }
 0xaeb   : > { %v2330_v32 = vadd.f32 1e-12, %v2328_v31 }
 0xaec   : > { %v1341_v33 = vpop.permute.xlu0 %1340 }
 0xaed   : > { %3094 = vrsqrt.f32 %v2330_v32  ;;  %1347 = vst.msk [vmem:[%s3345_s3] sm:$0xff] %vm1346_vm3, %v1341_v33 }
 0xaf3   : > { %v3093_v36 = vpop.eup %3092 }
 0xaf4   : > { %v2333_v20 = vmul.f32 %v3093_v36, %v2319_v22 }
 0xaf6   : > { %v2341_v39 = vmul.f32 %v2737_v37, %v2333_v20 }
 0xaf7   : > { %v3095_v47 = vpop.eup %3094 }
 0xaf8   : > { %v2349_v48 = vadd.f32 %v2738_v49, %v2341_v39  ;;  %v2334_v41 = vmul.f32 %v3095_v47, %v2320_v26 }
 0xafa   : > { %2351 = vst [vmem:[%s3339_s22] sm:$0xff] %v2349_v48  ;;  %v2342_v42 = vmul.f32 %v2737_v37, %v2334_v41 }
 0xafc   : > { %v2350_v45 = vadd.f32 %v2738_v49, %v2342_v42 }
 0xafe   : > { %2352 = vst [vmem:[%s3339_s22 + $0x8] sm:$0xff] %v2350_v45 }
 0xaff PF: > { %s3753_s3 = sld [smem:[#allocation5_spill]]  ;;  %s3754_s24 = sld [smem:[#allocation3_spill]] }
 0xb00   : > { %s3755_s25 = sld [smem:[#allocation4_spill]]  ;;  %s3756_s26 = sld [smem:[#allocation6_spill]] }
 0xb01   : > { %s3757_s27 = sld [smem:[#allocation7_spill]] }
 0xb05   : > { %s28_s28 = sadd.s32 1, %s3753_s3  }
 0xb06   : > { %p25_p8 = scmp.ge.s32.totalorder %s28_s28, 6  }
 0xb08   :  { %27 = sbr.rel (!%p25_p8) target bundleno = 17 (0x11), region = 169 }

</bundles_post_ra>
